<compile_context>
chip_gen: v6e
topology: v6e:2x2x1
jax: 0.10.0
libtpu: 0.0.40
codegen_flags: <defaults>
</compile_context>

<pallas_src>
import math

import jax
import jax.numpy as jnp
from jax.experimental import pallas as pl
from jax.experimental.pallas import tpu as pltpu

BN_EPS = 1e-5


# ---------------------------------------------------------------------------
# Pallas kernels
# ---------------------------------------------------------------------------
def _feature_kernel(x_ref, w_ref, b_ref, o_ref):
    """Synthetic backbone head: global average pool over spatial, 1x1 conv, ReLU.

    x_ref: (bn, HW, C) f32   w_ref: (C, F) bf16   b_ref: (1, F) f32
    o_ref: (bn, F) f32
    """
    pooled = jnp.mean(x_ref[...], axis=1)                      # (bn, C), f32
    y = jnp.dot(pooled.astype(jnp.bfloat16), w_ref[...],
                preferred_element_type=jnp.float32)            # MXU, f32 acc
    o_ref[...] = jnp.maximum(y + b_ref[...], 0.0)


def _mlp_fused_kernel(feat_ref,
                      w1_ref, s1_ref,
                      w2_ref, s2_ref,
                      w3_ref, s3_ref,
                      w4_ref, s4_ref,
                      w5_ref, b5_ref,
                      z_ref, p_ref):
    """Fused ProjectionMLP + PredictionMLP.

    feat_ref: (B, num_ftrs) f32
    wN_ref:   (K, N) bf16 weights
    sN_ref:   (2, N) f32   row 0 = BN gamma, row 1 = BN beta
    w5_ref/b5_ref: final prediction Linear (bias only, no BN)
    z_ref: (B, proj_out) f32    p_ref: (B, pred_out) f32

    All intermediate activations stay in VMEM/vregs; nothing is written back
    to HBM between layers.  Matmuls run bf16-in / f32-accumulate on the MXU,
    BN + ReLU run in f32 on the VPU.
    """
    def lin_bn(x, w_ref, s_ref, relu):
        # Linear bias omitted: training-mode BN subtracts the per-feature
        # batch mean, which cancels a per-feature bias exactly.
        y = jnp.dot(x.astype(jnp.bfloat16), w_ref[...],
                    preferred_element_type=jnp.float32)
        mean = jnp.mean(y, axis=0, keepdims=True)
        var = jnp.mean((y - mean) ** 2, axis=0, keepdims=True)  # biased (PyTorch)
        y = (y - mean) * jax.lax.rsqrt(var + BN_EPS)
        y = y * s_ref[0:1, :] + s_ref[1:2, :]
        if relu:
            y = jnp.maximum(y, 0.0)
        return y

    # ProjectionMLP (is_cifar_flag = False -> l1, l2, l3)
    h = lin_bn(feat_ref[...], w1_ref, s1_ref, True)
    h = lin_bn(h, w2_ref, s2_ref, True)
    z = lin_bn(h, w3_ref, s3_ref, False)
    z_ref[...] = z

    # PredictionMLP: l1 (Lin+BN+ReLU), l2 (Lin)
    h = lin_bn(z, w4_ref, s4_ref, True)
    p_ref[...] = (jnp.dot(h.astype(jnp.bfloat16), w5_ref[...],
                          preferred_element_type=jnp.float32)
                  + b5_ref[...])


# ---------------------------------------------------------------------------
# Wrappers
# ---------------------------------------------------------------------------
def feature_head(x_nchw, w, b, *, block_n=8):
    """x_nchw: (N, C, H, W) -> (N, F), blocked & pipelined over the batch axis."""
    n, c, h, wd = x_nchw.shape
    x_nlc = jnp.transpose(x_nchw, (0, 2, 3, 1)).reshape(n, h * wd, c)  # glue
    f = w.shape[1]
    assert n % block_n == 0, (n, block_n)
    return pl.pallas_call(
        _feature_kernel,
        out_shape=jax.ShapeDtypeStruct((n, f), jnp.float32),
        grid_spec=pltpu.PrefetchScalarGridSpec(
            num_scalar_prefetch=0,
            grid=(n // block_n,),
            in_specs=[
                pl.BlockSpec((block_n, h * wd, c), lambda i: (i, 0, 0)),
                pl.BlockSpec((c, f), lambda i: (0, 0)),
                pl.BlockSpec((1, f), lambda i: (0, 0)),
            ],
            out_specs=pl.BlockSpec((block_n, f), lambda i: (i, 0)),
        ),
        compiler_params=pltpu.CompilerParams(
            dimension_semantics=("parallel",)),   # 2-TC sharding on v7x
    )(x_nlc, w, b)


def mlp_forward(feat, params):
    """Fused ProjectionMLP + PredictionMLP: feat (B, num_ftrs) -> (z, p)."""
    bsz = feat.shape[0]
    proj_out = params["proj_w3"].shape[1]
    pred_out = params["pred_w2"].shape[1]

    operands = (
        feat,
        params["proj_w1"], params["proj_s1"],
        params["proj_w2"], params["proj_s2"],
        params["proj_w3"], params["proj_s3"],
        params["pred_w1"], params["pred_s1"],
        params["pred_w2"], params["pred_b2"],
    )

    def full2d(a):
        return pl.BlockSpec(a.shape, lambda i: (0, 0))

    return pl.pallas_call(
        _mlp_fused_kernel,
        out_shape=(jax.ShapeDtypeStruct((bsz, proj_out), jnp.float32),
                   jax.ShapeDtypeStruct((bsz, pred_out), jnp.float32)),
        grid_spec=pltpu.PrefetchScalarGridSpec(
            num_scalar_prefetch=0,
            grid=(1,),
            in_specs=[full2d(a) for a in operands],
            out_specs=[pl.BlockSpec((bsz, proj_out), lambda i: (0, 0)),
                       pl.BlockSpec((bsz, pred_out), lambda i: (0, 0))],
        ),
        compiler_params=pltpu.CompilerParams(
            dimension_semantics=("arbitrary",)),
    )(*operands)


# ---------------------------------------------------------------------------
# Parameter construction (deterministic, mirrors reset_parameters)
# ---------------------------------------------------------------------------
def _linear_params(key, in_dim, out_dim):
    stdv = 1.0 / math.sqrt(in_dim)
    kw, kb = jax.random.split(key)
    w = jax.random.uniform(kw, (in_dim, out_dim), jnp.float32, -stdv, stdv)
    b = jax.random.uniform(kb, (1, out_dim), jnp.float32, -stdv, stdv)
    return w.astype(jnp.bfloat16), b   # weights stored bf16 for the MXU


def _bn_side(dim):
    # PyTorch BatchNorm1d default init: gamma = 1, beta = 0.  Packed (2, dim).
    return jnp.concatenate(
        [jnp.ones((1, dim), jnp.float32), jnp.zeros((1, dim), jnp.float32)],
        axis=0)


def make_simsiam_params(key, in_c, num_ftrs, proj_mid, proj_out, pred_mid, pred_out):
    keys = jax.random.split(key, 7)
    # synthetic backbone head (1x1 conv): stdv = 1/sqrt(1*1*in_c)
    stdv = 1.0 / math.sqrt(in_c)
    fw = jax.random.uniform(keys[0], (in_c, num_ftrs), jnp.float32, -stdv, stdv)
    fb = jax.random.uniform(keys[1], (1, num_ftrs), jnp.float32, -stdv, stdv)

    p = {"feat_w": fw.astype(jnp.bfloat16), "feat_b": fb}
    # ProjectionMLP: l1 (Lin+BN+ReLU), l2 (Lin+BN+ReLU), l3 (Lin+BN)
    # Linear biases of BN layers are kept only for the f32 reference; inside
    # the kernel they cancel against the BN mean subtraction and are dropped.
    p["proj_w1"], p["proj_b1"] = _linear_params(keys[2], num_ftrs, proj_mid)
    p["proj_s1"] = _bn_side(proj_mid)
    p["proj_w2"], p["proj_b2"] = _linear_params(keys[3], proj_mid, proj_mid)
    p["proj_s2"] = _bn_side(proj_mid)
    p["proj_w3"], p["proj_b3"] = _linear_params(keys[4], proj_mid, proj_out)
    p["proj_s3"] = _bn_side(proj_out)
    # PredictionMLP: l1 (Lin+BN+ReLU), l2 (Lin)
    p["pred_w1"], p["pred_b1"] = _linear_params(keys[5], proj_out, pred_mid)
    p["pred_s1"] = _bn_side(pred_mid)
    p["pred_w2"], p["pred_b2"] = _linear_params(keys[6], pred_mid, pred_out)
    return p


# ---------------------------------------------------------------------------
# SimSiam forward
# ---------------------------------------------------------------------------
def simsiam_forward(params, x_nchw):
    feat = feature_head(x_nchw, params["feat_w"], params["feat_b"])   # features + flatten
    z, p = mlp_forward(feat, params)                                  # fused projection + prediction
    return z, p


# Pure-JAX reference for verification (same bf16 matmul inputs, f32 accumulate)
def _ref_forward(params, x_nchw):
    def bdot(x, w):
        return jnp.dot(x.astype(jnp.bfloat16), w,
                       preferred_element_type=jnp.float32)

    pooled = jnp.mean(x_nchw, axis=(2, 3))                 # (N, C)
    feat = jnp.maximum(bdot(pooled, params["feat_w"]) + params["feat_b"], 0.0)

    def lin_bn_relu(x, w, b, s, relu):
        y = bdot(x, w) + b          # bias cancels inside training-mode BN
        m = jnp.mean(y, axis=0, keepdims=True)
        v = jnp.mean((y - m) ** 2, axis=0, keepdims=True)
        y = (y - m) / jnp.sqrt(v + BN_EPS) * s[0:1] + s[1:2]
        if relu:
            y = jnp.maximum(y, 0.0)
        return y

    h1 = lin_bn_relu(feat, params["proj_w1"], params["proj_b1"], params["proj_s1"], True)
    h2 = lin_bn_relu(h1, params["proj_w2"], params["proj_b2"], params["proj_s2"], True)
    z = lin_bn_relu(h2, params["proj_w3"], params["proj_b3"], params["proj_s3"], False)
    h3 = lin_bn_relu(z, params["pred_w1"], params["pred_b1"], params["pred_s1"], True)
    p = bdot(h3, params["pred_w2"]) + params["pred_b2"]
    return z, p


if __name__ == "__main__":
    key = jax.random.PRNGKey(0)
    k_x, k_p = jax.random.split(key)

    # Small shapes consistent with the module structure (scaled down from
    # resnet50 num_ftrs=2048, proj 2048/2048, pred 512/2048).  B=16 with a
    # batch block of 8 exercises the pipelined feature-head grid.
    B, C, H, W = 16, 4, 16, 16
    NUM_FTRS, PROJ_MID, PROJ_OUT, PRED_MID, PRED_OUT = 256, 256, 256, 128, 256

    x = jax.random.normal(k_x, (B, C, H, W), jnp.float32)
    params = make_simsiam_params(k_p, C, NUM_FTRS, PROJ_MID, PROJ_OUT,
                                 PRED_MID, PRED_OUT)

    z, p = simsiam_forward(params, x)
    jax.block_until_ready((z, p))

    z_ref, p_ref = _ref_forward(params, x)
    assert z.shape == (B, PROJ_OUT) and p.shape == (B, PRED_OUT)
    assert jnp.allclose(z, z_ref, atol=1e-2, rtol=1e-2)
    assert jnp.allclose(p, p_ref, atol=1e-2, rtol=1e-2)

    print("KERNEL_OK")
</pallas_src>

<mosaic_0001>
module attributes {stable_mosaic.version = 11 : i64} {
  func.func @_feature_kernel(%arg0: i32, %arg1: memref<8x256x4xf32, #tpu.memory_space<vmem>>, %arg2: memref<4x256xbf16, #tpu.memory_space<vmem>>, %arg3: memref<1x256xf32, #tpu.memory_space<vmem>>, %arg4: memref<8x256xf32, #tpu.memory_space<vmem>>) attributes {dimension_semantics = [#tpu.dimension_semantics<parallel>], iteration_bounds = array<i64: 2>, scalar_prefetch = 0 : i64, scratch_operands = 0 : i64, tpu.core_type = #tpu.core_type<tc>, window_params = [{transform_indices = @transform_0, window_bounds = array<i64: 8, 256, 4>}, {pipeline_mode = #tpu.pipeline_mode<synchronous>, transform_indices = @transform_1, window_bounds = array<i64: 4, 256>}, {pipeline_mode = #tpu.pipeline_mode<synchronous>, transform_indices = @transform_2, window_bounds = array<i64: 1, 256>}, {transform_indices = @transform_3, window_bounds = array<i64: 8, 256>}]} {
    %c0 = arith.constant 0 : index
    %c0_0 = arith.constant 0 : index
    %c0_1 = arith.constant 0 : index
    %0 = vector.load %arg1[%c0, %c0_0, %c0_1] : memref<8x256x4xf32, #tpu.memory_space<vmem>>, vector<8x256x4xf32>
    %cst = arith.constant dense<0.000000e+00> : vector<8x4xf32>
    %1 = vector.multi_reduction <add>, %0, %cst [1] : vector<8x256x4xf32> to vector<8x4xf32>
    %cst_2 = arith.constant 2.560000e+02 : f32
    %2 = vector.broadcast %cst_2 : f32 to vector<8x4xf32>
    %3 = arith.divf %1, %2 : vector<8x4xf32>
    %4 = arith.truncf %3 : vector<8x4xf32> to vector<8x4xbf16>
    %c0_3 = arith.constant 0 : index
    %c0_4 = arith.constant 0 : index
    %5 = vector.load %arg2[%c0_3, %c0_4] : memref<4x256xbf16, #tpu.memory_space<vmem>>, vector<4x256xbf16>
    %cst_5 = arith.constant dense<0.000000e+00> : vector<8x256xf32>
    %6 = tpu.matmul %4, %5, %cst_5 {dimension_numbers = #tpu.dot_dimension_numbers<[1], [0], [0], [1], [0, 0, 1, 1], [], []>} : vector<8x4xbf16>, vector<4x256xbf16>, vector<8x256xf32> -> vector<8x256xf32>
    %c0_6 = arith.constant 0 : index
    %c0_7 = arith.constant 0 : index
    %7 = vector.load %arg3[%c0_6, %c0_7] : memref<1x256xf32, #tpu.memory_space<vmem>>, vector<1x256xf32>
    %8 = vector.broadcast %7 : vector<1x256xf32> to vector<8x256xf32>
    %9 = arith.addf %6, %8 : vector<8x256xf32>
    %cst_8 = arith.constant 0.000000e+00 : f32
    %10 = vector.broadcast %cst_8 : f32 to vector<8x256xf32>
    %11 = arith.maximumf %9, %10 : vector<8x256xf32>
    %c0_9 = arith.constant 0 : index
    %c0_10 = arith.constant 0 : index
    %12 = vector.load %arg4[%c0_9, %c0_10] : memref<8x256xf32, #tpu.memory_space<vmem>>, vector<8x256xf32>
    tpu.vector_store %arg4[%c0_9, %c0_10], %11 {strides = array<i32>} : memref<8x256xf32, #tpu.memory_space<vmem>>, vector<8x256xf32>,
    return
  }
  func.func @transform_0(%arg0: i32) -> (i32, i32, i32) {
    %c0_i32 = arith.constant 0 : i32
    %c0_i32_0 = arith.constant 0 : i32
    %c0_i32_1 = arith.constant 0 : i32
    return %arg0, %c0_i32, %c0_i32_0 : i32, i32, i32
  }
  func.func @transform_1(%arg0: i32) -> (i32, i32) {
    %c0_i32 = arith.constant 0 : i32
    %c0_i32_0 = arith.constant 0 : i32
    %c0_i32_1 = arith.constant 0 : i32
    return %c0_i32, %c0_i32_0 : i32, i32
  }
  func.func @transform_2(%arg0: i32) -> (i32, i32) {
    %c0_i32 = arith.constant 0 : i32
    %c0_i32_0 = arith.constant 0 : i32
    %c0_i32_1 = arith.constant 0 : i32
    return %c0_i32, %c0_i32_0 : i32, i32
  }
  func.func @transform_3(%arg0: i32) -> (i32, i32) {
    %c0_i32 = arith.constant 0 : i32
    %c0_i32_0 = arith.constant 0 : i32
    return %arg0, %c0_i32 : i32, i32
  }
}

</mosaic_0001>

<bundles_post_ra>
// kernel: tpu_custom_call.1
= control target key start
LH: loop header
LB: loop body
LE: loop exit
PB: predicated region body
PF: predicated region fallthrough
CT: control target
= control target key end

     0   :  { %8 = vsyncpa [#allocation3], 0  ;;  %s2092_s0 = inlined_call_operand.vmem [shape: f32[16,256,4], index: 0, kind: input, shape index: {}]   ;;  %s2093_s1 = inlined_call_operand.vmem [shape: bf16[4,256], index: 1, kind: input, shape index: {}]   ;;  %s2094_s2 = inlined_call_operand.vmem [shape: f32[1,256], index: 2, kind: input, shape index: {}]   ;;  %s2095_s3 = inlined_call_operand.hbm [shape: f32[16,256], index: 3, kind: output, shape index: {}]  }
   0x1   :  { %10 = vsyncpa [#allocation3 + $0x1], 0  ;;  %s1325_s12 = smov 0   ;;  %s1327_s13 = smov 0  }
   0x2   :  { %s1329_s14 = smov 0   ;;  %s1331_s15 = smov 0  }
   0x3 LB: > { %s1346_s16 = sadd.s32 4294967295, %s1301_s15   ;;  %s1183_s17 = sadd.s32 4294967294, %s1301_s15   ;;  %s1301_s15 = sphi %s1331_s15, %s2101_s15   ;;  %s1297_s14 = sphi %s1329_s14, %s2100_s14   ;;  %s1293_s13 = sphi %s1327_s13, %s2099_s13   ;;  %s1289_s12 = sphi %s1325_s12, %s2098_s12  }
   0x4   : > { %s1350_s18 = sadd.s32 1, %s1301_s15   ;;  %s91_s19 = sadd.s32 1, %s1297_s14 }
   0x5   : > { %s88_s20 = ssub.s32 %s1301_s15, %s1350_s18  ;;  %p101_p0 = scmp.ne.s32.totalorder %s1297_s14, %s1293_s13 }
   0x6   : > { %p89_p1 = scmp.eq.s32.totalorder %s88_s20, 0  ;;  %p102_p2 = scmp.eq.s32.totalorder %s1346_s16, 1 }
   0x7   : > { %p107_p3 = scmp.ne.s32.totalorder %s1293_s13, %s1289_s12  ;;  %p108_p4 = scmp.eq.s32.totalorder %s1183_s17, 1 }
   0x8   : > { %s1361_s21 = scalar_select %p89_p1, %s1297_s14, %s91_s19  }
   0x9   : > { %p1363_p5 = por %p102_p2, %p101_p0  ;;  %p1367_p6 = por %p108_p4, %p107_p3 }
   0xa   : > { %p1186_p7 = scmp.ge.s32.totalorder %s1301_s15, 1  ;;  %p142_p8 = scmp.lt.s32.totalorder %s1301_s15, 3 }
   0xc   : > { %p143_p9 = pnand %p1186_p7, %p142_p8 }
   0xd   : > { %s1188_s24 = sshll.u32 (!%p143_p9), %s1346_s16, 3  ;;  %s164_s4 = sand.u32 (!%p143_p9), 1, %s1293_s13  }
   0xe   : > { %146 = sbr.rel (%p143_p9) target bundleno = 407 (0x197), region = 32  ;;  %p168_p10 = scmp.lt.s32.totalorder (!%p143_p9), %s1188_s24, 15 }
   0xf   : > { %s1187_s7 = sshll.u32 (!%p143_p9), %s164_s4, 4  ;;  %s1200_s8 = sshll.u32 (!%p143_p9), %s1346_s16, 8 }
  0x10   : > { %s166_s9 = scalar_lea.vmem (!%p143_p9), [#allocation2], %s1187_s7  ;;  %s2057_s19 = scalar_lea.hbm (!%p143_p9), %s2095_s3, %s1200_s8 }
  0x11   : > { %s1124_s10 = sshll.u32 (!%p143_p9), %s166_s9, 4  ;;  %s1110_s20 = scalar_lea.sflag (!%p143_p9), [#allocation3], %s164_s4  ;;  %s1125_s10 = int_to_ptr.vmem [resolvable:$true] %s1124_s10 }
  0x12   : > { %s1304_s16 = smov (!%p143_p9), [#allocation2]  }
  0x13   : > { %s2103_s24 = smov (!%p168_p10, %s1188_s24), 15  ;;  %vm431_vm0 = vcmask 31744   ;;  %vm1057_vm1 = vcmask 1041408   ;;  %vm1030_vm2 = vcmask 1041409   ;;  %vm1032_vm3 = vcmask 1042434  }
  0x14   : > { %s1199_s25 = sshll.u32 %s2103_s24, 8  ;;  %vm1034_vm4 = vcmask 1043459   ;;  %vm1036_vm5 = vcmask 1044484   ;;  %vm1038_vm6 = vcmask 1045509   ;;  %vm1040_vm7 = vcmask 1046534   ;;  %s1241_s24 = scalar_lea.vmem %s1125_s10, 256 }
  0x15   : > { %s1377_s28 = scalar_lea.vmem %s2092_s0, %s1199_s25  ;;  %vm1042_vm8 = vcmask 1047559   ;;  %p1242_p11 = scmp.ne.s32.totalorder %s1125_s10, %s1241_s24 }
  0x16   : > { %v175_v0 = vld [vmem:[%s1377_s28] sm:$0xff]  ;;  %v176_v1 = vld [vmem:[%s1377_s28 + $0x8] sm:$0xff]  ;;  %v177_v2 = vld [vmem:[%s1377_s28 + $0x10] sm:$0xff]  ;;  %s1245_s25 = sshll.u32 %s1304_s16, 4  ;;  %s1246_s25 = int_to_ptr.vmem [resolvable:$false] %s1245_s25 }
  0x17   : > { %v178_v3 = vld [vmem:[%s1377_s28 + $0x18] sm:$0xff]  ;;  %v432_v4 = vsel %vm431_vm0, %v175_v0, 0.0  ;;  %v433_v5 = vsel %vm431_vm0, %v176_v1, 0.0  ;;  %v435_v6 = vsel %vm431_vm0, %v177_v2, 0.0  ;;  %v179_v7 = vld [vmem:[%s1377_s28 + $0x20] sm:$0xff]  ;;  %v180_v10 = vld [vmem:[%s1377_s28 + $0x28] sm:$0xff]  ;;  %p1243_p12 = pnand %p1242_p11, %p1363_p5  ;;  %p1248_p0 = scmp.lt.s32.totalorder %s1125_s10, %s1246_s25 }
  0x18   : > { %v434_v8 = vadd.f32 %v433_v5, %v432_v4  ;;  %v437_v9 = vsel %vm431_vm0, %v178_v3, 0.0  ;;  %v439_v12 = vsel %vm431_vm0, %v179_v7, 0.0  ;;  %v181_v13 = vld [vmem:[%s1377_s28 + $0x30] sm:$0xff]  ;;  %v441_v15 = vsel %vm431_vm0, %v180_v10, 0.0  ;;  %v182_v16 = vld [vmem:[%s1377_s28 + $0x38] sm:$0xff]  ;;  %v183_v19 = vld [vmem:[%s1377_s28 + $0x40] sm:$0xff] }
  0x19   : > { %v443_v18 = vsel %vm431_vm0, %v181_v13, 0.0  ;;  %v207_v20 = vld [vmem:[%s1377_s28 + $0x100] sm:$0xff]  ;;  %v208_v22 = vld [vmem:[%s1377_s28 + $0x108] sm:$0xff]  ;;  %v209_v23 = vld [vmem:[%s1377_s28 + $0x110] sm:$0xff]  ;;  %v445_v25 = vsel %vm431_vm0, %v182_v16, 0.0  ;;  %v447_v32 = vsel %vm431_vm0, %v183_v19, 0.0  ;;  %p1244_p13 = pneg %p1243_p12 }
  0x1a   : > { %v436_v11 = vadd.f32 %v435_v6, %v434_v8  ;;  %v210_v24 = vld [vmem:[%s1377_s28 + $0x118] sm:$0xff]  ;;  %v501_v26 = vsel %vm431_vm0, %v207_v20, 0.0  ;;  %v184_v27 = vld [vmem:[%s1377_s28 + $0x48] sm:$0xff]  ;;  %v502_v29 = vsel %vm431_vm0, %v208_v22, 0.0  ;;  %v504_v30 = vsel %vm431_vm0, %v209_v23, 0.0  ;;  %v211_v31 = vld [vmem:[%s1377_s28 + $0x120] sm:$0xff] }
  0x1b   : > { %v503_v33 = vadd.f32 %v502_v29, %v501_v26  ;;  %v185_v34 = vld [vmem:[%s1377_s28 + $0x50] sm:$0xff]  ;;  %v506_v36 = vsel %vm431_vm0, %v210_v24, 0.0  ;;  %v212_v37 = vld [vmem:[%s1377_s28 + $0x128] sm:$0xff]  ;;  %v449_v38 = vsel %vm431_vm0, %v184_v27, 0.0  ;;  %v186_v40 = vld [vmem:[%s1377_s28 + $0x58] sm:$0xff]  ;;  %v508_v42 = vsel %vm431_vm0, %v211_v31, 0.0 }
  0x1c   : > { %v438_v14 = vadd.f32 %v437_v9, %v436_v11  ;;  %v213_v43 = vld [vmem:[%s1377_s28 + $0x130] sm:$0xff]  ;;  %v451_v44 = vsel %vm431_vm0, %v185_v34, 0.0  ;;  %v510_v47 = vsel %vm431_vm0, %v212_v37, 0.0  ;;  %v214_v48 = vld [vmem:[%s1377_s28 + $0x138] sm:$0xff]  ;;  %v453_v49 = vsel %vm431_vm0, %v186_v40, 0.0  ;;  %v187_v51 = vld [vmem:[%s1377_s28 + $0x60] sm:$0xff] }
  0x1d   : > { %v505_v39 = vadd.f32 %v504_v30, %v503_v33  ;;  %v512_v53 = vsel %vm431_vm0, %v213_v43, 0.0  ;;  %v215_v54 = vld [vmem:[%s1377_s28 + $0x140] sm:$0xff]  ;;  %v240_v56 = vld [vmem:[%s1377_s28 + $0x208] sm:$0xff]  ;;  %v241_v58 = vld [vmem:[%s1377_s28 + $0x210] sm:$0xff]  ;;  %v514_v61 = vsel %vm431_vm0, %v214_v48, 0.0  ;;  %v455_v2 = vsel %vm431_vm0, %v187_v51, 0.0 }
  0x1e   : > { %v440_v17 = vadd.f32 %v439_v12, %v438_v14  ;;  %v239_v55 = vld [vmem:[%s1377_s28 + $0x200] sm:$0xff]  ;;  %v242_v59 = vld [vmem:[%s1377_s28 + $0x218] sm:$0xff]  ;;  %v571_v63 = vsel %vm431_vm0, %v240_v56, 0.0  ;;  %v216_v0 = vld [vmem:[%s1377_s28 + $0x148] sm:$0xff]  ;;  %v573_v5 = vsel %vm431_vm0, %v241_v58, 0.0  ;;  %v516_v7 = vsel %vm431_vm0, %v215_v54, 0.0 }
  0x1f   : > { %v507_v45 = vadd.f32 %v506_v36, %v505_v39  ;;  %v570_v62 = vsel %vm431_vm0, %v239_v55, 0.0  ;;  %v243_v1 = vld [vmem:[%s1377_s28 + $0x220] sm:$0xff]  ;;  %v188_v6 = vld [vmem:[%s1377_s28 + $0x68] sm:$0xff]  ;;  %v575_v8 = vsel %vm431_vm0, %v242_v59, 0.0  ;;  %v217_v12 = vld [vmem:[%s1377_s28 + $0x150] sm:$0xff]  ;;  %v518_v14 = vsel %vm431_vm0, %v216_v0, 0.0 }
  0x20   : > { %v442_v21 = vadd.f32 %v441_v15, %v440_v17  ;;  %v572_v4 = vadd.f32 %v571_v63, %v570_v62  ;;  %v244_v9 = vld [vmem:[%s1377_s28 + $0x228] sm:$0xff]  ;;  %v577_v15 = vsel %vm431_vm0, %v243_v1, 0.0  ;;  %v245_v16 = vld [vmem:[%s1377_s28 + $0x230] sm:$0xff]  ;;  %v457_v17 = vsel %vm431_vm0, %v188_v6, 0.0  ;;  %v246_v22 = vld [vmem:[%s1377_s28 + $0x238] sm:$0xff]  ;;  %s1247_s26 = scalar_lea.vmem %s1246_s25, 512 }
  0x21   : > { %v509_v50 = vadd.f32 %v508_v42, %v507_v45  ;;  %v189_v20 = vld [vmem:[%s1377_s28 + $0x70] sm:$0xff]  ;;  %v520_v24 = vsel %vm431_vm0, %v217_v12, 0.0  ;;  %v218_v26 = vld [vmem:[%s1377_s28 + $0x158] sm:$0xff]  ;;  %v272_v33 = vld [vmem:[%s1377_s28 + $0x308] sm:$0xff]  ;;  %p1249_p1 = scmp.lt.s32.totalorder %s1247_s26, %s1241_s24 }
  0x22   : > { %v444_v28 = vadd.f32 %v443_v18, %v442_v21  ;;  %v574_v11 = vadd.f32 %v573_v5, %v572_v4  ;;  %v579_v21 = vsel %vm431_vm0, %v244_v9, 0.0  ;;  %v459_v29 = vsel %vm431_vm0, %v189_v20, 0.0  ;;  %v190_v31 = vld [vmem:[%s1377_s28 + $0x78] sm:$0xff]  ;;  %v247_v36 = vld [vmem:[%s1377_s28 + $0x240] sm:$0xff]  ;;  %v273_v37 = vld [vmem:[%s1377_s28 + $0x310] sm:$0xff] }
  0x23   : > { %v511_v57 = vadd.f32 %v510_v47, %v509_v50  ;;  %v219_v40 = vld [vmem:[%s1377_s28 + $0x160] sm:$0xff]  ;;  %v461_v43 = vsel %vm431_vm0, %v190_v31, 0.0  ;;  %v585_v50 = vsel %vm431_vm0, %v247_v36, 0.0  ;;  %v220_v56 = vld [vmem:[%s1377_s28 + $0x168] sm:$0xff]  ;;  %v277_v0 = vld [vmem:[%s1377_s28 + $0x330] sm:$0xff]  ;;  %p1250_p2 = por %p1249_p1, %p1248_p0 }
  0x24   : > { %v446_v35 = vadd.f32 %v445_v25, %v444_v28  ;;  %v576_v19 = vadd.f32 %v575_v8, %v574_v11  ;;  %v581_v28 = vsel %vm431_vm0, %v245_v16, 0.0  ;;  %v191_v47 = vld [vmem:[%s1377_s28 + $0x80] sm:$0xff]  ;;  %v524_v54 = vsel %vm431_vm0, %v219_v40, 0.0  ;;  %v192_v63 = vld [vmem:[%s1377_s28 + $0x88] sm:$0xff]  ;;  %v249_v4 = vld [vmem:[%s1377_s28 + $0x250] sm:$0xff] }
  0x25   : > { %v513_v3 = vadd.f32 %v512_v53, %v511_v57  ;;  %v275_v48 = vld [vmem:[%s1377_s28 + $0x320] sm:$0xff]  ;;  %v248_v53 = vld [vmem:[%s1377_s28 + $0x248] sm:$0xff]  ;;  %v526_v5 = vsel %vm431_vm0, %v220_v56, 0.0  ;;  %v278_v8 = vld [vmem:[%s1377_s28 + $0x338] sm:$0xff]  ;;  %v465_v11 = vsel %vm431_vm0, %v192_v63, 0.0  ;;  %p1251_p3 = pnand %p1250_p2, %p1244_p13 }
  0x26   : > { %v448_v41 = vadd.f32 %v447_v32, %v446_v35  ;;  %v578_v25 = vadd.f32 %v577_v15, %v576_v19  ;;  %v271_v32 = vld [vmem:[%s1377_s28 + $0x300] sm:$0xff]  ;;  %v583_v35 = vsel %vm431_vm0, %v246_v22, 0.0  ;;  %v276_v57 = vld [vmem:[%s1377_s28 + $0x328] sm:$0xff]  ;;  %v646_v62 = vsel %vm431_vm0, %v275_v48, 0.0  ;;  %v194_v19 = vld [vmem:[%s1377_s28 + $0x98] sm:$0xff] }
  0x27   : > { %v515_v10 = vadd.f32 %v514_v61, %v513_v3  ;;  %v639_v45 = vsel %vm431_vm0, %v271_v32, 0.0  ;;  %v648_v6 = vsel %vm431_vm0, %v276_v57, 0.0  ;;  %v279_v15 = vld [vmem:[%s1377_s28 + $0x340] sm:$0xff]  ;;  %v250_v20 = vld [vmem:[%s1377_s28 + $0x258] sm:$0xff]  ;;  %v652_v22 = vsel %vm431_vm0, %v278_v8, 0.0  ;;  %v305_v40 = vld [vmem:[%s1377_s28 + $0x410] sm:$0xff] }
  0x28   : > { %v450_v46 = vadd.f32 %v449_v38, %v448_v41  ;;  %v580_v30 = vadd.f32 %v579_v21, %v578_v25  ;;  %v522_v38 = vsel %vm431_vm0, %v218_v26, 0.0  ;;  %v274_v41 = vld [vmem:[%s1377_s28 + $0x318] sm:$0xff]  ;;  %v280_v25 = vld [vmem:[%s1377_s28 + $0x348] sm:$0xff]  ;;  %v654_v32 = vsel %vm431_vm0, %v279_v15, 0.0  ;;  %v205_v15 = vld [vmem:[%s1377_s28 + $0xf0] sm:$0xff] }
  0x29   : > { %v517_v18 = vadd.f32 %v516_v7, %v515_v10  ;;  %v644_v55 = vsel %vm431_vm0, %v274_v41, 0.0  ;;  %v221_v7 = vld [vmem:[%s1377_s28 + $0x170] sm:$0xff]  ;;  %v469_v41 = vsel %vm431_vm0, %v194_v19, 0.0  ;;  %v224_v8 = vld [vmem:[%s1377_s28 + $0x188] sm:$0xff] }
  0x2a   : > { %v452_v52 = vadd.f32 %v451_v44, %v450_v46  ;;  %v582_v39 = vadd.f32 %v581_v28, %v580_v30  ;;  %v640_v46 = vsel %vm431_vm0, %v272_v33, 0.0  ;;  %v528_v21 = vsel %vm431_vm0, %v221_v7, 0.0  ;;  %v196_v28 = vld [vmem:[%s1377_s28 + $0xa8] sm:$0xff]  ;;  %v281_v33 = vld [vmem:[%s1377_s28 + $0x350] sm:$0xff]  ;;  %v203_v7 = vld [vmem:[%s1377_s28 + $0xe0] sm:$0xff] }
  0x2b   : > { %v519_v23 = vadd.f32 %v518_v14, %v517_v18  ;;  %v641_v51 = vadd.f32 %v640_v46, %v639_v45  ;;  %v193_v14 = vld [vmem:[%s1377_s28 + $0x90] sm:$0xff]  ;;  %v198_v45 = vld [vmem:[%s1377_s28 + $0xb8] sm:$0xff]  ;;  %v223_v46 = vld [vmem:[%s1377_s28 + $0x180] sm:$0xff] }
  0x2c   : > { %v454_v60 = vadd.f32 %v453_v49, %v452_v52  ;;  %v584_v44 = vadd.f32 %v583_v35, %v582_v39  ;;  %v642_v52 = vsel %vm431_vm0, %v273_v37, 0.0  ;;  %v467_v30 = vsel %vm431_vm0, %v193_v14, 0.0  ;;  %v304_v35 = vld [vmem:[%s1377_s28 + $0x408] sm:$0xff]  ;;  %v197_v39 = vld [vmem:[%s1377_s28 + $0xb0] sm:$0xff] }
  0x2d   : > { %v521_v34 = vadd.f32 %v520_v24, %v519_v23  ;;  %v643_v59 = vadd.f32 %v642_v52, %v641_v51  ;;  %v195_v23 = vld [vmem:[%s1377_s28 + $0xa0] sm:$0xff]  ;;  %v222_v24 = vld [vmem:[%s1377_s28 + $0x178] sm:$0xff]  ;;  %v591_v37 = vsel %vm431_vm0, %v250_v20, 0.0  ;;  %v709_v57 = vsel %vm431_vm0, %v304_v35, 0.0  ;;  %v204_v14 = vld [vmem:[%s1377_s28 + $0xe8] sm:$0xff] }
  0x2e   : > { %v456_v13 = vadd.f32 %v455_v2, %v454_v60  ;;  %v463_v60 = vsel %vm431_vm0, %v191_v47, 0.0  ;;  %v586_v61 = vadd.f32 %v585_v50, %v584_v44  ;;  %v587_v2 = vsel %vm431_vm0, %v248_v53, 0.0  ;;  %v306_v47 = vld [vmem:[%s1377_s28 + $0x418] sm:$0xff]  ;;  %v199_v52 = vld [vmem:[%s1377_s28 + $0xc0] sm:$0xff]  ;;  %v200_v53 = vld [vmem:[%s1377_s28 + $0xc8] sm:$0xff] }
  0x2f   : > { %v523_v49 = vadd.f32 %v522_v38, %v521_v34  ;;  %v645_v3 = vadd.f32 %v644_v55, %v643_v59  ;;  %v303_v34 = vld [vmem:[%s1377_s28 + $0x400] sm:$0xff]  ;;  %v656_v44 = vsel %vm431_vm0, %v280_v25, 0.0  ;;  %v658_v55 = vsel %vm431_vm0, %v281_v33, 0.0  ;;  %v282_v59 = vld [vmem:[%s1377_s28 + $0x358] sm:$0xff] }
  0x30   : > { %v458_v27 = vadd.f32 %v457_v17, %v456_v13  ;;  %v588_v12 = vadd.f32 %v587_v2, %v586_v61  ;;  %v650_v13 = vsel %vm431_vm0, %v277_v0, 0.0  ;;  %v589_v17 = vsel %vm431_vm0, %v249_v4, 0.0  ;;  %v252_v2 = vld [vmem:[%s1377_s28 + $0x268] sm:$0xff]  ;;  %v283_v20 = vld [vmem:[%s1377_s28 + $0x360] sm:$0xff]  ;;  %v226_v33 = vld [vmem:[%s1377_s28 + $0x198] sm:$0xff] }
  0x31   : > { %v525_v1 = vadd.f32 %v524_v54, %v523_v49  ;;  %v647_v10 = vadd.f32 %v646_v62, %v645_v3  ;;  %v1510_v49 = vsel %vm431_vm0, %v196_v28, 0.0  ;;  %v708_v56 = vsel %vm431_vm0, %v303_v34, 0.0  ;;  %v310_v34 = vld [vmem:[%s1377_s28 + $0x438] sm:$0xff] }
  0x32   : > { %v460_v42 = vadd.f32 %v459_v29, %v458_v27  ;;  %v251_v29 = vld [vmem:[%s1377_s28 + $0x260] sm:$0xff]  ;;  %v590_v31 = vadd.f32 %v589_v17, %v588_v12  ;;  %v710_v63 = vadd.f32 %v709_v57, %v708_v56  ;;  %v711_v0 = vsel %vm431_vm0, %v305_v40, 0.0  ;;  %v228_v40 = vld [vmem:[%s1377_s28 + $0x1a8] sm:$0xff] }
  0x33   : > { %v527_v16 = vadd.f32 %v526_v5, %v525_v1  ;;  %v649_v18 = vadd.f32 %v648_v6, %v647_v10  ;;  %v593_v50 = vsel %vm431_vm0, %v251_v29, 0.0  ;;  %v202_v1 = vld [vmem:[%s1377_s28 + $0xd8] sm:$0xff]  ;;  %v1525_v3 = vsel %vm431_vm0, %v197_v39, 0.0  ;;  %v227_v39 = vld [vmem:[%s1377_s28 + $0x1a0] sm:$0xff] }
  0x34   : > { %v462_v58 = vadd.f32 %v461_v43, %v460_v42  ;;  %v1502_v42 = vsel %vm431_vm0, %v195_v23, 0.0  ;;  %v530_v43 = vsel %vm431_vm0, %v222_v24, 0.0  ;;  %v592_v54 = vadd.f32 %v591_v37, %v590_v31 }
  0x35   : > { %v651_v27 = vadd.f32 %v650_v13, %v649_v18  ;;  %v529_v36 = vadd.f32 %v528_v21, %v527_v16  ;;  %v1528_v4 = vsel %vm431_vm0, %v198_v45, 0.0  ;;  %v532_v5 = vsel %vm431_vm0, %v223_v46, 0.0  ;;  %v309_v21 = vld [vmem:[%s1377_s28 + $0x430] sm:$0xff]  ;;  %v284_v46 = vld [vmem:[%s1377_s28 + $0x368] sm:$0xff] }
  0x36   : > { %v464_v9 = vadd.f32 %v463_v60, %v462_v58  ;;  %v201_v58 = vld [vmem:[%s1377_s28 + $0xd0] sm:$0xff]  ;;  %v307_v60 = vld [vmem:[%s1377_s28 + $0x420] sm:$0xff]  ;;  %v713_v6 = vsel %vm431_vm0, %v306_v47, 0.0  ;;  %v1536_v10 = vsel %vm431_vm0, %v199_v52, 0.0  ;;  %v712_v13 = vadd.f32 %v711_v0, %v710_v63 }
  0x37   : > { %v653_v38 = vadd.f32 %v652_v22, %v651_v27  ;;  %v531_v61 = vadd.f32 %v530_v43, %v529_v36  ;;  %v594_v17 = vadd.f32 %v593_v50, %v592_v54  ;;  %v660_v18 = vsel %vm431_vm0, %v282_v59, 0.0  ;;  %v253_v27 = vld [vmem:[%s1377_s28 + $0x270] sm:$0xff]  ;;  %v311_v47 = vld [vmem:[%s1377_s28 + $0x440] sm:$0xff]  ;;  %v254_v54 = vld [vmem:[%s1377_s28 + $0x278] sm:$0xff] }
  0x38   : > { %v466_v26 = vadd.f32 %v465_v11, %v464_v9  ;;  %v308_v9 = vld [vmem:[%s1377_s28 + $0x428] sm:$0xff]  ;;  %v1539_v11 = vsel %vm431_vm0, %v200_v53, 0.0  ;;  %v715_v19 = vsel %vm431_vm0, %v307_v60, 0.0  ;;  %v1548_v22 = vsel %vm431_vm0, %v201_v58, 0.0  ;;  %v230_v53 = vld [vmem:[%s1377_s28 + $0x1b8] sm:$0xff]  ;;  %v231_v58 = vld [vmem:[%s1377_s28 + $0x1c0] sm:$0xff] }
  0x39   : > { %v655_v51 = vadd.f32 %v654_v32, %v653_v38  ;;  %v533_v23 = vadd.f32 %v532_v5, %v531_v61  ;;  %v595_v24 = vsel %vm431_vm0, %v252_v2, 0.0  ;;  %v714_v25 = vadd.f32 %v713_v6, %v712_v13  ;;  %v225_v32 = vld [vmem:[%s1377_s28 + $0x190] sm:$0xff]  ;;  %v232_v59 = vld [vmem:[%s1377_s28 + $0x1c8] sm:$0xff]  ;;  %v234_v2 = vld [vmem:[%s1377_s28 + $0x1d8] sm:$0xff] }
  0x3a   : > { %v468_v48 = vadd.f32 %v467_v30, %v466_v26  ;;  %v206_v26 = vld [vmem:[%s1377_s28 + $0xf8] sm:$0xff]  ;;  %v1554_v28 = vsel %vm431_vm0, %v202_v1, 0.0  ;;  %v1557_v29 = vsel %vm431_vm0, %v203_v7, 0.0  ;;  %v534_v30 = vsel %vm431_vm0, %v224_v8, 0.0  ;;  %v312_v60 = vld [vmem:[%s1377_s28 + $0x448] sm:$0xff]  ;;  %v233_v1 = vld [vmem:[%s1377_s28 + $0x1d0] sm:$0xff] }
  0x3b   : > { %v657_v62 = vadd.f32 %v656_v44, %v655_v51  ;;  %v717_v31 = vsel %vm431_vm0, %v308_v9, 0.0  ;;  %v1565_v35 = vsel %vm431_vm0, %v204_v14, 0.0  ;;  %v1568_v36 = vsel %vm431_vm0, %v205_v15, 0.0  ;;  %v285_v9 = vld [vmem:[%s1377_s28 + $0x370] sm:$0xff] }
  0x3c   : > { %v470_v16 = vadd.f32 %v469_v41, %v468_v48  ;;  %v716_v38 = vadd.f32 %v715_v19, %v714_v25  ;;  %v596_v43 = vadd.f32 %v595_v24, %v594_v17  ;;  %v662_v44 = vsel %vm431_vm0, %v283_v20, 0.0  ;;  %v255_v17 = vld [vmem:[%s1377_s28 + $0x280] sm:$0xff]  ;;  %v237_v24 = vld [vmem:[%s1377_s28 + $0x1f0] sm:$0xff]  ;;  %v314_v25 = vld [vmem:[%s1377_s28 + $0x458] sm:$0xff] }
  0x3d   : > { %v659_v12 = vadd.f32 %v658_v55, %v657_v62  ;;  %v719_v45 = vsel %vm431_vm0, %v309_v21, 0.0  ;;  %v1578_v48 = vsel %vm431_vm0, %v206_v26, 0.0  ;;  %v535_v50 = vadd.f32 %v534_v30, %v533_v23  ;;  %v236_v23 = vld [vmem:[%s1377_s28 + $0x1e8] sm:$0xff] }
  0x3e   : > { %v472_v41 = vadd.f32 %v1502_v42, %v470_v16  ;;  %v597_v51 = vsel %vm431_vm0, %v253_v27, 0.0  ;;  %v718_v52 = vadd.f32 %v717_v31, %v716_v38  ;;  %v229_v42 = vld [vmem:[%s1377_s28 + $0x1b0] sm:$0xff]  ;;  %v536_v55 = vsel %vm431_vm0, %v225_v32, 0.0  ;;  %v238_v32 = vld [vmem:[%s1377_s28 + $0x1f8] sm:$0xff] }
  0x3f   : > { %v661_v37 = vadd.f32 %v660_v18, %v659_v12  ;;  %v538_v56 = vsel %vm431_vm0, %v226_v33, 0.0  ;;  %v721_v57 = vsel %vm431_vm0, %v310_v34, 0.0  ;;  %v540_v61 = vsel %vm431_vm0, %v227_v39, 0.0  ;;  %v313_v12 = vld [vmem:[%s1377_s28 + $0x450] sm:$0xff]  ;;  %v256_v33 = vld [vmem:[%s1377_s28 + $0x288] sm:$0xff] }
  0x40   : > { %v1592_v62 = vsel %vm431_vm0, %v228_v40, 0.0  ;;  %v720_v0 = vadd.f32 %v719_v45, %v718_v52  ;;  %v474_v5 = vadd.f32 %v1510_v49, %v472_v41  ;;  %v598_v6 = vadd.f32 %v597_v51, %v596_v43  ;;  %v235_v49 = vld [vmem:[%s1377_s28 + $0x1e0] sm:$0xff]  ;;  %v286_v40 = vld [vmem:[%s1377_s28 + $0x378] sm:$0xff] }
  0x41   : > { %v663_v63 = vadd.f32 %v662_v44, %v661_v37  ;;  %v664_v7 = vsel %vm431_vm0, %v284_v46, 0.0  ;;  %v723_v8 = vsel %vm431_vm0, %v311_v47, 0.0  ;;  %v537_v13 = vadd.f32 %v536_v55, %v535_v50  ;;  %v315_v41 = vld [vmem:[%s1377_s28 + $0x460] sm:$0xff]  ;;  %v257_v47 = vld [vmem:[%s1377_s28 + $0x290] sm:$0xff] }
  0x42   : > { %v1602_v14 = vsel %vm431_vm0, %v229_v42, 0.0  ;;  %v599_v15 = vsel %vm431_vm0, %v254_v54, 0.0  ;;  %v722_v16 = vadd.f32 %v721_v57, %v720_v0  ;;  %v1608_v18 = vsel %vm431_vm0, %v230_v53, 0.0  ;;  %v335_v50 = vld [vmem:[%s1377_s28 + $0x500] sm:$0xff]  ;;  %v316_v53 = vld [vmem:[%s1377_s28 + $0x468] sm:$0xff]  ;;  %v337_v55 = vld [vmem:[%s1377_s28 + $0x510] sm:$0xff] }
  0x43   : > { %v1611_v19 = vsel %vm431_vm0, %v231_v58, 0.0  ;;  %v1614_v20 = vsel %vm431_vm0, %v232_v59, 0.0  ;;  %v725_v21 = vsel %vm431_vm0, %v312_v60, 0.0  ;;  %v1621_v26 = vsel %vm431_vm0, %v233_v1, 0.0  ;;  %v336_v54 = vld [vmem:[%s1377_s28 + $0x508] sm:$0xff]  ;;  %v287_v60 = vld [vmem:[%s1377_s28 + $0x380] sm:$0xff] }
  0x44   : > { %v1624_v27 = vsel %vm431_vm0, %v234_v2, 0.0  ;;  %v665_v30 = vadd.f32 %v664_v7, %v663_v63  ;;  %v724_v31 = vadd.f32 %v723_v8, %v722_v16  ;;  %v476_v34 = vadd.f32 %v1525_v3, %v474_v5  ;;  %v258_v3 = vld [vmem:[%s1377_s28 + $0x298] sm:$0xff]  ;;  %v317_v5 = vld [vmem:[%s1377_s28 + $0x470] sm:$0xff] }
  0x45   : > { %v600_v37 = vadd.f32 %v599_v15, %v598_v6  ;;  %v666_v38 = vsel %vm431_vm0, %v285_v9, 0.0  ;;  %v727_v39 = vsel %vm431_vm0, %v313_v12, 0.0  ;;  %v539_v43 = vadd.f32 %v538_v56, %v537_v13  ;;  %v338_v6 = vld [vmem:[%s1377_s28 + $0x518] sm:$0xff]  ;;  %v259_v13 = vld [vmem:[%s1377_s28 + $0x2a0] sm:$0xff]  ;;  %v260_v15 = vld [vmem:[%s1377_s28 + $0x2a8] sm:$0xff] }
  0x46   : > { %v1634_v44 = vsel %vm431_vm0, %v235_v49, 0.0  ;;  %v601_v45 = vsel %vm431_vm0, %v255_v17, 0.0  ;;  %v726_v46 = vadd.f32 %v725_v21, %v724_v31  ;;  %v1641_v51 = vsel %vm431_vm0, %v236_v23, 0.0  ;;  %v261_v21 = vld [vmem:[%s1377_s28 + $0x2b0] sm:$0xff]  ;;  %v339_v23 = vld [vmem:[%s1377_s28 + $0x520] sm:$0xff] }
  0x47   : > { %v1644_v52 = vsel %vm431_vm0, %v237_v24, 0.0  ;;  %v729_v42 = vsel %vm431_vm0, %v314_v25, 0.0  ;;  %v1651_v56 = vsel %vm431_vm0, %v238_v32, 0.0  ;;  %v603_v57 = vsel %vm431_vm0, %v256_v33, 0.0  ;;  %v288_v32 = vld [vmem:[%s1377_s28 + $0x388] sm:$0xff] }
  0x48   : > { %v667_v58 = vadd.f32 %v666_v38, %v665_v30  ;;  %v728_v59 = vadd.f32 %v727_v39, %v726_v46  ;;  %v478_v63 = vadd.f32 %v1528_v4, %v476_v34  ;;  %v602_v0 = vadd.f32 %v601_v45, %v600_v37  ;;  %v319_v39 = vld [vmem:[%s1377_s28 + $0x480] sm:$0xff] }
  0x49   : > { %v668_v1 = vsel %vm431_vm0, %v286_v40, 0.0  ;;  %v731_v2 = vsel %vm431_vm0, %v315_v41, 0.0  ;;  %v541_v7 = vadd.f32 %v540_v61, %v539_v43  ;;  %v605_v8 = vsel %vm431_vm0, %v257_v47, 0.0  ;;  %v318_v61 = vld [vmem:[%s1377_s28 + $0x478] sm:$0xff]  ;;  %v340_v40 = vld [vmem:[%s1377_s28 + $0x528] sm:$0xff] }
  0x4a   : > { %v730_v9 = vadd.f32 %v729_v42, %v728_v59  ;;  %v777_v12 = vsel %vm431_vm0, %v335_v50, 0.0  ;;  %v607_v4 = vsel %vm431_vm0, %v258_v3, 0.0  ;;  %v733_v16 = vsel %vm431_vm0, %v316_v53, 0.0  ;;  %v262_v47 = vld [vmem:[%s1377_s28 + $0x2b8] sm:$0xff]  ;;  %v264_v53 = vld [vmem:[%s1377_s28 + $0x2c8] sm:$0xff] }
  0x4b   : > { %v778_v49 = vsel %vm431_vm0, %v336_v54, 0.0  ;;  %v780_v17 = vsel %vm431_vm0, %v337_v55, 0.0  ;;  %v669_v24 = vadd.f32 %v668_v1, %v667_v58  ;;  %v670_v25 = vsel %vm431_vm0, %v287_v60, 0.0  ;;  %v320_v54 = vld [vmem:[%s1377_s28 + $0x488] sm:$0xff]  ;;  %v341_v55 = vld [vmem:[%s1377_s28 + $0x530] sm:$0xff] }
  0x4c   : > { %v732_v30 = vadd.f32 %v731_v2, %v730_v9  ;;  %v779_v31 = vadd.f32 %v778_v49, %v777_v12  ;;  %v480_v33 = vadd.f32 %v1536_v10, %v478_v63  ;;  %v604_v34 = vadd.f32 %v603_v57, %v602_v0  ;;  %v263_v10 = vld [vmem:[%s1377_s28 + $0x2c0] sm:$0xff]  ;;  %v265_v63 = vld [vmem:[%s1377_s28 + $0x2d0] sm:$0xff] }
  0x4d   : > { %v735_v37 = vsel %vm431_vm0, %v317_v5, 0.0  ;;  %v782_v38 = vsel %vm431_vm0, %v338_v6, 0.0  ;;  %v543_v41 = vadd.f32 %v1592_v62, %v541_v7  ;;  %v1680_v43 = vsel %vm431_vm0, %v259_v13, 0.0  ;;  %v289_v6 = vld [vmem:[%s1377_s28 + $0x390] sm:$0xff]  ;;  %v342_v7 = vld [vmem:[%s1377_s28 + $0x538] sm:$0xff] }
  0x4e   : > { %v734_v45 = vadd.f32 %v733_v16, %v732_v30  ;;  %v781_v46 = vadd.f32 %v780_v17, %v779_v31  ;;  %v1685_v3 = vsel %vm431_vm0, %v260_v15, 0.0  ;;  %v1688_v50 = vsel %vm431_vm0, %v261_v21, 0.0  ;;  %v267_v16 = vld [vmem:[%s1377_s28 + $0x2e0] sm:$0xff]  ;;  %v268_v21 = vld [vmem:[%s1377_s28 + $0x2e8] sm:$0xff] }
  0x4f   : > { %v737_v42 = vsel %vm431_vm0, %v318_v61, 0.0  ;;  %v784_v62 = vsel %vm431_vm0, %v339_v23, 0.0  ;;  %v671_v57 = vadd.f32 %v670_v25, %v669_v24  ;;  %v672_v58 = vsel %vm431_vm0, %v288_v32, 0.0  ;;  %v321_v61 = vld [vmem:[%s1377_s28 + $0x490] sm:$0xff]  ;;  %v343_v23 = vld [vmem:[%s1377_s28 + $0x540] sm:$0xff] }
  0x50   : > { %v736_v59 = vadd.f32 %v735_v37, %v734_v45  ;;  %v783_v60 = vadd.f32 %v782_v38, %v781_v46  ;;  %v482_v0 = vadd.f32 %v1539_v11, %v480_v33  ;;  %v606_v1 = vadd.f32 %v605_v8, %v604_v34  ;;  %v266_v11 = vld [vmem:[%s1377_s28 + $0x2d8] sm:$0xff]  ;;  %v269_v32 = vld [vmem:[%s1377_s28 + $0x2f0] sm:$0xff] }
  0x51   : > { %v739_v2 = vsel %vm431_vm0, %v319_v39, 0.0  ;;  %v786_v5 = vsel %vm431_vm0, %v340_v40, 0.0  ;;  %v545_v9 = vadd.f32 %v1602_v14, %v543_v41  ;;  %v1704_v12 = vsel %vm431_vm0, %v262_v47, 0.0  ;;  %v270_v33 = vld [vmem:[%s1377_s28 + $0x2f8] sm:$0xff]  ;;  %v344_v41 = vld [vmem:[%s1377_s28 + $0x548] sm:$0xff] }
  0x52   : > { %v738_v13 = vadd.f32 %v737_v42, %v736_v59  ;;  %v785_v15 = vadd.f32 %v784_v62, %v783_v60  ;;  %v1709_v8 = vsel %vm431_vm0, %v263_v10, 0.0  ;;  %v1712_v49 = vsel %vm431_vm0, %v264_v53, 0.0  ;;  %v290_v40 = vld [vmem:[%s1377_s28 + $0x398] sm:$0xff]  ;;  %v292_v42 = vld [vmem:[%s1377_s28 + $0x3a8] sm:$0xff] }
  0x53   : > { %v741_v17 = vsel %vm431_vm0, %v320_v54, 0.0  ;;  %v788_v14 = vsel %vm431_vm0, %v341_v55, 0.0  ;;  %v1720_v24 = vsel %vm431_vm0, %v265_v63, 0.0  ;;  %v673_v25 = vadd.f32 %v672_v58, %v671_v57  ;;  %v293_v54 = vld [vmem:[%s1377_s28 + $0x3b0] sm:$0xff]  ;;  %v322_v55 = vld [vmem:[%s1377_s28 + $0x498] sm:$0xff] }
  0x54   : > { %v740_v30 = vadd.f32 %v739_v2, %v738_v13  ;;  %v787_v31 = vadd.f32 %v786_v5, %v785_v15  ;;  %v484_v34 = vadd.f32 %v1548_v22, %v482_v0  ;;  %v608_v37 = vadd.f32 %v607_v4, %v606_v1  ;;  %v291_v22 = vld [vmem:[%s1377_s28 + $0x3a0] sm:$0xff]  ;;  %v345_v57 = vld [vmem:[%s1377_s28 + $0x550] sm:$0xff]  ;;  %v294_v0 = vld [vmem:[%s1377_s28 + $0x3b8] sm:$0xff] }
  0x55   : > { %v674_v38 = vsel %vm431_vm0, %v289_v6, 0.0  ;;  %v790_v39 = vsel %vm431_vm0, %v342_v7, 0.0  ;;  %v547_v45 = vadd.f32 %v1608_v18, %v545_v9  ;;  %v1731_v46 = vsel %vm431_vm0, %v266_v11, 0.0  ;;  %v295_v1 = vld [vmem:[%s1377_s28 + $0x3c0] sm:$0xff]  ;;  %v296_v9 = vld [vmem:[%s1377_s28 + $0x3c8] sm:$0xff]  ;;  %v346_v13 = vld [vmem:[%s1377_s28 + $0x558] sm:$0xff] }
  0x56   : > { %v742_v47 = vadd.f32 %v741_v17, %v740_v30  ;;  %v789_v10 = vadd.f32 %v788_v14, %v787_v31  ;;  %v1736_v4 = vsel %vm431_vm0, %v267_v16, 0.0  ;;  %v1739_v62 = vsel %vm431_vm0, %v268_v21, 0.0  ;;  %v323_v14 = vld [vmem:[%s1377_s28 + $0x4a0] sm:$0xff]  ;;  %v369_v30 = vld [vmem:[%s1377_s28 + $0x610] sm:$0xff] }
  0x57   : > { %v743_v53 = vsel %vm431_vm0, %v321_v61, 0.0  ;;  %v792_v18 = vsel %vm431_vm0, %v343_v23, 0.0  ;;  %v1747_v58 = vsel %vm431_vm0, %v269_v32, 0.0  ;;  %v1750_v59 = vsel %vm431_vm0, %v270_v33, 0.0 }
  0x58   : > { %v675_v60 = vadd.f32 %v674_v38, %v673_v25  ;;  %v791_v63 = vadd.f32 %v790_v39, %v789_v10  ;;  %v486_v2 = vadd.f32 %v1554_v28, %v484_v34  ;;  %v610_v5 = vadd.f32 %v1680_v43, %v608_v37  ;;  %v367_v28 = vld [vmem:[%s1377_s28 + $0x600] sm:$0xff]  ;;  %v368_v25 = vld [vmem:[%s1377_s28 + $0x608] sm:$0xff]  ;;  %v297_v37 = vld [vmem:[%s1377_s28 + $0x3d0] sm:$0xff] }
  0x59   : > { %v676_v6 = vsel %vm431_vm0, %v290_v40, 0.0  ;;  %v794_v7 = vsel %vm431_vm0, %v344_v41, 0.0  ;;  %v549_v15 = vadd.f32 %v1611_v19, %v547_v45  ;;  %v678_v11 = vsel %vm431_vm0, %v291_v22, 0.0  ;;  %v347_v19 = vld [vmem:[%s1377_s28 + $0x560] sm:$0xff]  ;;  %v298_v45 = vld [vmem:[%s1377_s28 + $0x3d8] sm:$0xff] }
  0x5a   : > { %v744_v16 = vadd.f32 %v743_v53, %v742_v47  ;;  %v793_v17 = vadd.f32 %v792_v18, %v791_v63  ;;  %v680_v21 = vsel %vm431_vm0, %v292_v42, 0.0  ;;  %v1766_v43 = vsel %vm431_vm0, %v293_v54, 0.0  ;;  %v348_v47 = vld [vmem:[%s1377_s28 + $0x568] sm:$0xff]  ;;  %v370_v10 = vld [vmem:[%s1377_s28 + $0x618] sm:$0xff]  ;;  %v371_v63 = vld [vmem:[%s1377_s28 + $0x620] sm:$0xff] }
  0x5b   : > { %v745_v61 = vsel %vm431_vm0, %v322_v55, 0.0  ;;  %v796_v23 = vsel %vm431_vm0, %v345_v57, 0.0  ;;  %v677_v31 = vadd.f32 %v676_v6, %v675_v60  ;;  %v1774_v32 = vsel %vm431_vm0, %v294_v0, 0.0  ;;  %v324_v57 = vld [vmem:[%s1377_s28 + $0x4a8] sm:$0xff]  ;;  %v349_v60 = vld [vmem:[%s1377_s28 + $0x570] sm:$0xff] }
  0x5c   : > { %v1777_v33 = vsel %vm431_vm0, %v295_v1, 0.0  ;;  %v795_v34 = vadd.f32 %v794_v7, %v793_v17  ;;  %v488_v38 = vadd.f32 %v1557_v29, %v486_v2  ;;  %v612_v39 = vadd.f32 %v1685_v3, %v610_v5  ;;  %v299_v5 = vld [vmem:[%s1377_s28 + $0x3e0] sm:$0xff] }
  0x5d   : > { %v1783_v40 = vsel %vm431_vm0, %v296_v9, 0.0  ;;  %v798_v41 = vsel %vm431_vm0, %v346_v13, 0.0  ;;  %v551_v22 = vadd.f32 %v1614_v20, %v549_v15  ;;  %v746_v42 = vadd.f32 %v745_v61, %v744_v16  ;;  %v300_v15 = vld [vmem:[%s1377_s28 + $0x3e8] sm:$0xff] }
  0x5e   : > { %v797_v53 = vadd.f32 %v796_v23, %v795_v34  ;;  %v846_v18 = vsel %vm431_vm0, %v367_v28, 0.0  ;;  %v747_v29 = vsel %vm431_vm0, %v323_v14, 0.0  ;;  %v800_v3 = vsel %vm431_vm0, %v347_v19, 0.0  ;;  %v372_v16 = vld [vmem:[%s1377_s28 + $0x628] sm:$0xff]  ;;  %v373_v34 = vld [vmem:[%s1377_s28 + $0x630] sm:$0xff] }
  0x5f   : > { %v847_v54 = vsel %vm431_vm0, %v368_v25, 0.0  ;;  %v849_v55 = vsel %vm431_vm0, %v369_v30, 0.0  ;;  %v679_v0 = vadd.f32 %v678_v11, %v677_v31  ;;  %v1799_v20 = vsel %vm431_vm0, %v297_v37, 0.0  ;;  %v350_v11 = vld [vmem:[%s1377_s28 + $0x578] sm:$0xff]  ;;  %v325_v30 = vld [vmem:[%s1377_s28 + $0x4b0] sm:$0xff]  ;;  %v351_v31 = vld [vmem:[%s1377_s28 + $0x580] sm:$0xff] }
  0x60   : > { %v799_v1 = vadd.f32 %v798_v41, %v797_v53  ;;  %v848_v2 = vadd.f32 %v847_v54, %v846_v18  ;;  %v614_v6 = vadd.f32 %v1688_v50, %v612_v39  ;;  %v1804_v7 = vsel %vm431_vm0, %v298_v45, 0.0  ;;  %v301_v41 = vld [vmem:[%s1377_s28 + $0x3f0] sm:$0xff] }
  0x61   : > { %v802_v9 = vsel %vm431_vm0, %v348_v47, 0.0  ;;  %v851_v13 = vsel %vm431_vm0, %v370_v10, 0.0  ;;  %v490_v17 = vadd.f32 %v1565_v35, %v488_v38  ;;  %v748_v14 = vadd.f32 %v747_v29, %v746_v42  ;;  %v374_v42 = vld [vmem:[%s1377_s28 + $0x638] sm:$0xff] }
  0x62   : > { %v801_v28 = vadd.f32 %v800_v3, %v799_v1  ;;  %v850_v61 = vadd.f32 %v849_v55, %v848_v2  ;;  %v553_v50 = vadd.f32 %v1621_v26, %v551_v22  ;;  %v749_v23 = vsel %vm431_vm0, %v324_v57, 0.0  ;;  %v302_v22 = vld [vmem:[%s1377_s28 + $0x3f8] sm:$0xff] }
  0x63   : > { %v804_v19 = vsel %vm431_vm0, %v349_v60, 0.0  ;;  %v853_v25 = vsel %vm431_vm0, %v371_v63, 0.0  ;;  %v681_v37 = vadd.f32 %v680_v21, %v679_v0  ;;  %v1820_v35 = vsel %vm431_vm0, %v299_v5, 0.0  ;;  %v352_v21 = vld [vmem:[%s1377_s28 + $0x588] sm:$0xff]  ;;  %v326_v60 = vld [vmem:[%s1377_s28 + $0x4b8] sm:$0xff]  ;;  %v353_v63 = vld [vmem:[%s1377_s28 + $0x590] sm:$0xff] }
  0x64   : > { %v803_v38 = vadd.f32 %v802_v9, %v801_v28  ;;  %v852_v39 = vadd.f32 %v851_v13, %v850_v61  ;;  %v616_v26 = vadd.f32 %v1704_v12, %v614_v6  ;;  %v1825_v45 = vsel %vm431_vm0, %v300_v15, 0.0  ;;  %v375_v0 = vld [vmem:[%s1377_s28 + $0x640] sm:$0xff] }
  0x65   : > { %v806_v47 = vsel %vm431_vm0, %v350_v11, 0.0  ;;  %v855_v10 = vsel %vm431_vm0, %v372_v16, 0.0  ;;  %v492_v53 = vadd.f32 %v1568_v36, %v490_v17  ;;  %v750_v18 = vadd.f32 %v749_v23, %v748_v14  ;;  %v327_v5 = vld [vmem:[%s1377_s28 + $0x4c0] sm:$0xff]  ;;  %v354_v11 = vld [vmem:[%s1377_s28 + $0x598] sm:$0xff]  ;;  %v376_v16 = vld [vmem:[%s1377_s28 + $0x648] sm:$0xff] }
  0x66   : > { %v805_v29 = vadd.f32 %v804_v19, %v803_v38  ;;  %v854_v3 = vadd.f32 %v853_v25, %v852_v39  ;;  %v555_v12 = vadd.f32 %v1624_v27, %v553_v50  ;;  %v751_v54 = vsel %vm431_vm0, %v325_v30, 0.0  ;;  %v377_v50 = vld [vmem:[%s1377_s28 + $0x650] sm:$0xff] }
  0x67   : > { %v808_v55 = vsel %vm431_vm0, %v351_v31, 0.0  ;;  %v857_v57 = vsel %vm431_vm0, %v373_v34, 0.0  ;;  %v683_v1 = vadd.f32 %v1766_v43, %v681_v37  ;;  %v1842_v36 = vsel %vm431_vm0, %v301_v41, 0.0  ;;  %v328_v43 = vld [vmem:[%s1377_s28 + $0x4c8] sm:$0xff]  ;;  %v399_v31 = vld [vmem:[%s1377_s28 + $0x700] sm:$0xff]  ;;  %v401_v34 = vld [vmem:[%s1377_s28 + $0x710] sm:$0xff] }
  0x68   : > { %v807_v27 = vadd.f32 %v806_v47, %v805_v29  ;;  %v856_v2 = vadd.f32 %v855_v10, %v854_v3  ;;  %v618_v6 = vadd.f32 %v1709_v8, %v616_v26  ;;  %v1847_v9 = vsel %vm431_vm0, %v302_v22, 0.0  ;;  %v355_v8 = vld [vmem:[%s1377_s28 + $0x5a0] sm:$0xff]  ;;  %v356_v22 = vld [vmem:[%s1377_s28 + $0x5a8] sm:$0xff]  ;;  %v329_v3 = vld [vmem:[%s1377_s28 + $0x4d0] sm:$0xff] }
  0x69   : > { %v810_v13 = vsel %vm431_vm0, %v352_v21, 0.0  ;;  %v859_v15 = vsel %vm431_vm0, %v374_v42, 0.0  ;;  %v1855_v17 = vadd.f32 %v1578_v48, %v492_v53  ;;  %v752_v14 = vadd.f32 %v751_v54, %v750_v18  ;;  %v400_v48 = vld [vmem:[%s1377_s28 + $0x708] sm:$0xff]  ;;  %v378_v21 = vld [vmem:[%s1377_s28 + $0x658] sm:$0xff] }
  0x6a   : > { %v809_v28 = vadd.f32 %v808_v55, %v807_v27  ;;  %v858_v61 = vadd.f32 %v857_v57, %v856_v2  ;;  %v1860_v23 = vadd.f32 %v1634_v44, %v555_v12  ;;  %v753_v19 = vsel %vm431_vm0, %v326_v60, 0.0  ;;  %v402_v42 = vld [vmem:[%s1377_s28 + $0x718] sm:$0xff]  ;;  %v357_v57 = vld [vmem:[%s1377_s28 + $0x5b0] sm:$0xff]  ;;  %v379_v60 = vld [vmem:[%s1377_s28 + $0x660] sm:$0xff] }
  0x6b   : > { %v812_v25 = vsel %vm431_vm0, %v353_v63, 0.0  ;;  %v861_v30 = vsel %vm431_vm0, %v375_v0, 0.0  ;;  %v685_v37 = vadd.f32 %v1774_v32, %v683_v1  ;;  %v755_v38 = vsel %vm431_vm0, %v327_v5, 0.0  ;;  %v403_v63 = vld [vmem:[%s1377_s28 + $0x720] sm:$0xff] }
  0x6c   : > { %v811_v39 = vadd.f32 %v810_v13, %v809_v28  ;;  %v860_v41 = vadd.f32 %v859_v15, %v858_v61  ;;  %v620_v44 = vadd.f32 %v1712_v49, %v618_v6  ;;  %v757_v26 = vsel %vm431_vm0, %v328_v43, 0.0  ;;  %v358_v43 = vld [vmem:[%s1377_s28 + $0x5b8] sm:$0xff] }
  0x6d   : > { %v814_v47 = vsel %vm431_vm0, %v354_v11, 0.0  ;;  %v863_v10 = vsel %vm431_vm0, %v376_v16, 0.0  ;;  %v754_v53 = vadd.f32 %v753_v19, %v752_v14  ;;  %v816_v18 = vsel %vm431_vm0, %v355_v8, 0.0  ;;  %v380_v11 = vld [vmem:[%s1377_s28 + $0x668] sm:$0xff] }
  0x6e   : > { %v813_v32 = vadd.f32 %v812_v25, %v811_v39  ;;  %v862_v29 = vadd.f32 %v861_v30, %v860_v41  ;;  %v865_v49 = vsel %vm431_vm0, %v377_v50, 0.0  ;;  %v915_v12 = vsel %vm431_vm0, %v399_v31, 0.0  ;;  %v404_v16 = vld [vmem:[%s1377_s28 + $0x728] sm:$0xff]  ;;  %v359_v25 = vld [vmem:[%s1377_s28 + $0x5c0] sm:$0xff]  ;;  %v381_v30 = vld [vmem:[%s1377_s28 + $0x670] sm:$0xff] }
  0x6f   : > { %v916_v54 = vsel %vm431_vm0, %v400_v48, 0.0  ;;  %v918_v55 = vsel %vm431_vm0, %v401_v34, 0.0  ;;  %v687_v0 = vadd.f32 %v1777_v33, %v685_v37  ;;  %v622_v5 = vadd.f32 %v1720_v24, %v620_v44  ;;  %v405_v31 = vld [vmem:[%s1377_s28 + $0x730] sm:$0xff] }
  0x70   : > { %v815_v1 = vadd.f32 %v814_v47, %v813_v32  ;;  %v864_v27 = vadd.f32 %v863_v10, %v862_v29  ;;  %v917_v2 = vadd.f32 %v916_v54, %v915_v12  ;;  %v818_v6 = vsel %vm431_vm0, %v356_v22, 0.0  ;;  %v360_v10 = vld [vmem:[%s1377_s28 + $0x5c8] sm:$0xff]  ;;  %v382_v22 = vld [vmem:[%s1377_s28 + $0x678] sm:$0xff]  ;;  %v361_v12 = vld [vmem:[%s1377_s28 + $0x5d0] sm:$0xff] }
  0x71   : > { %v867_v13 = vsel %vm431_vm0, %v378_v21, 0.0  ;;  %v920_v15 = vsel %vm431_vm0, %v402_v42, 0.0  ;;  %v759_v14 = vsel %vm431_vm0, %v329_v3, 0.0  ;;  %v756_v8 = vadd.f32 %v755_v38, %v754_v53  ;;  %v406_v21 = vld [vmem:[%s1377_s28 + $0x738] sm:$0xff]  ;;  %v383_v54 = vld [vmem:[%s1377_s28 + $0x680] sm:$0xff] }
  0x72   : > { %v817_v33 = vadd.f32 %v816_v18, %v815_v1  ;;  %v866_v28 = vadd.f32 %v865_v49, %v864_v27  ;;  %v919_v61 = vadd.f32 %v918_v55, %v917_v2  ;;  %v820_v24 = vsel %vm431_vm0, %v357_v57, 0.0  ;;  %v330_v18 = vld [vmem:[%s1377_s28 + $0x4d8] sm:$0xff]  ;;  %v407_v55 = vld [vmem:[%s1377_s28 + $0x740] sm:$0xff]  ;;  %v384_v27 = vld [vmem:[%s1377_s28 + $0x688] sm:$0xff] }
  0x73   : > { %v869_v50 = vsel %vm431_vm0, %v379_v60, 0.0  ;;  %v922_v19 = vsel %vm431_vm0, %v403_v63, 0.0  ;;  %v689_v48 = vadd.f32 %v1783_v40, %v687_v0  ;;  %v624_v41 = vadd.f32 %v1731_v46, %v622_v5  ;;  %v408_v2 = vld [vmem:[%s1377_s28 + $0x748] sm:$0xff] }
  0x74   : > { %v819_v34 = vadd.f32 %v818_v6, %v817_v33  ;;  %v868_v37 = vadd.f32 %v867_v13, %v866_v28  ;;  %v921_v39 = vadd.f32 %v920_v15, %v919_v61  ;;  %v822_v38 = vsel %vm431_vm0, %v358_v43, 0.0  ;;  %v385_v33 = vld [vmem:[%s1377_s28 + $0x690] sm:$0xff] }
  0x75   : > { %v871_v44 = vsel %vm431_vm0, %v380_v11, 0.0  ;;  %v924_v47 = vsel %vm431_vm0, %v404_v16, 0.0  ;;  %v559_v40 = vadd.f32 %v1641_v51, %v1860_v23  ;;  %v758_v46 = vadd.f32 %v757_v26, %v756_v8  ;;  %v362_v16 = vld [vmem:[%s1377_s28 + $0x5d8] sm:$0xff]  ;;  %v409_v28 = vld [vmem:[%s1377_s28 + $0x750] sm:$0xff] }
  0x76   : > { %v821_v42 = vadd.f32 %v820_v24, %v819_v34  ;;  %v870_v53 = vadd.f32 %v869_v50, %v868_v37  ;;  %v923_v32 = vadd.f32 %v922_v19, %v921_v39  ;;  %v824_v29 = vsel %vm431_vm0, %v359_v25, 0.0  ;;  %v331_v19 = vld [vmem:[%s1377_s28 + $0x4e0] sm:$0xff]  ;;  %v410_v34 = vld [vmem:[%s1377_s28 + $0x758] sm:$0xff] }
  0x77   : > { %v873_v3 = vsel %vm431_vm0, %v381_v30, 0.0  ;;  %v926_v49 = vsel %vm431_vm0, %v405_v31, 0.0  ;;  %v691_v57 = vadd.f32 %v1799_v20, %v689_v48  ;;  %v626_v63 = vadd.f32 %v1736_v4, %v624_v41  ;;  %v386_v48 = vld [vmem:[%s1377_s28 + $0x698] sm:$0xff] }
  0x78   : > { %v823_v60 = vadd.f32 %v822_v38, %v821_v42  ;;  %v872_v51 = vadd.f32 %v871_v44, %v870_v53  ;;  %v925_v23 = vadd.f32 %v924_v47, %v923_v32  ;;  %v826_v26 = vsel %vm431_vm0, %v360_v10, 0.0  ;;  %v332_v38 = vld [vmem:[%s1377_s28 + $0x4e8] sm:$0xff]  ;;  %v363_v10 = vld [vmem:[%s1377_s28 + $0x5e0] sm:$0xff] }
  0x79   : > { %v875_v0 = vsel %vm431_vm0, %v382_v22, 0.0  ;;  %v928_v1 = vsel %vm431_vm0, %v406_v21, 0.0  ;;  %v761_v5 = vsel %vm431_vm0, %v330_v18, 0.0  ;;  %v760_v15 = vadd.f32 %v759_v14, %v758_v46  ;;  %v387_v22 = vld [vmem:[%s1377_s28 + $0x6a0] sm:$0xff]  ;;  %v333_v18 = vld [vmem:[%s1377_s28 + $0x4f0] sm:$0xff] }
  0x7a   : > { %v825_v20 = vadd.f32 %v824_v29, %v823_v60  ;;  %v874_v6 = vadd.f32 %v873_v3, %v872_v51  ;;  %v927_v13 = vadd.f32 %v926_v49, %v925_v23  ;;  %v828_v43 = vsel %vm431_vm0, %v361_v12, 0.0  ;;  %v411_v21 = vld [vmem:[%s1377_s28 + $0x760] sm:$0xff]  ;;  %v388_v12 = vld [vmem:[%s1377_s28 + $0x6a8] sm:$0xff]  ;;  %v334_v51 = vld [vmem:[%s1377_s28 + $0x4f8] sm:$0xff] }
  0x7b   : > { %v877_v4 = vsel %vm431_vm0, %v383_v54, 0.0  ;;  %v930_v11 = vsel %vm431_vm0, %v407_v55, 0.0  ;;  %v693_v61 = vadd.f32 %v1804_v7, %v691_v57  ;;  %v561_v14 = vadd.f32 %v1644_v52, %v559_v40  ;;  %v412_v54 = vld [vmem:[%s1377_s28 + $0x768] sm:$0xff] }
  0x7c   : > { %v827_v8 = vadd.f32 %v826_v26, %v825_v20  ;;  %v876_v24 = vadd.f32 %v875_v0, %v874_v6  ;;  %v929_v50 = vadd.f32 %v928_v1, %v927_v13  ;;  %v628_v25 = vadd.f32 %v1739_v62, %v626_v63  ;;  %v364_v26 = vld [vmem:[%s1377_s28 + $0x5e8] sm:$0xff]  ;;  %v389_v0 = vld [vmem:[%s1377_s28 + $0x6b0] sm:$0xff] }
  0x7d   : > { %v879_v30 = vsel %vm431_vm0, %v384_v27, 0.0  ;;  %v932_v31 = vsel %vm431_vm0, %v408_v2, 0.0  ;;  %v495_v37 = vrot.slane %v1855_v17, 4  ;;  %v762_v44 = vadd.f32 %v761_v5, %v760_v15  ;;  %v413_v1 = vld [vmem:[%s1377_s28 + $0x770] sm:$0xff] }
  0x7e   : > { %v829_v7 = vadd.f32 %v828_v43, %v827_v8  ;;  %v878_v39 = vadd.f32 %v877_v4, %v876_v24  ;;  %v931_v41 = vadd.f32 %v930_v11, %v929_v50  ;;  %v830_v52 = vsel %vm431_vm0, %v362_v16, 0.0  ;;  %v390_v4 = vld [vmem:[%s1377_s28 + $0x6b8] sm:$0xff] }
  0x7f   : > { %v881_v62 = vsel %vm431_vm0, %v385_v33, 0.0  ;;  %v934_v47 = vsel %vm431_vm0, %v409_v28, 0.0  ;;  %v695_v40 = vadd.f32 %v1820_v35, %v693_v61  ;;  %v763_v42 = vsel %vm431_vm0, %v331_v19, 0.0  ;;  %v414_v11 = vld [vmem:[%s1377_s28 + $0x778] sm:$0xff]  ;;  %v365_v61 = vld [vmem:[%s1377_s28 + $0x5f0] sm:$0xff]  ;;  %v391_v19 = vld [vmem:[%s1377_s28 + $0x6c0] sm:$0xff] }
  0x80   : > { %v880_v53 = vadd.f32 %v879_v30, %v878_v39  ;;  %v933_v32 = vadd.f32 %v932_v31, %v931_v41  ;;  %v563_v46 = vadd.f32 %v1651_v56, %v561_v14  ;;  %v630_v29 = vadd.f32 %v1747_v58, %v628_v25  ;;  %v415_v14 = vld [vmem:[%s1377_s28 + $0x780] sm:$0xff] }
  0x81   : > { %v883_v3 = vsel %vm431_vm0, %v386_v48, 0.0  ;;  %v936_v49 = vsel %vm431_vm0, %v410_v34, 0.0  ;;  %v765_v35 = vsel %vm431_vm0, %v332_v38, 0.0  ;;  %v831_v55 = vadd.f32 %v830_v52, %v829_v7  ;;  %v416_v38 = vld [vmem:[%s1377_s28 + $0x788] sm:$0xff] }
  0x82   : > { %v882_v57 = vadd.f32 %v881_v62, %v880_v53  ;;  %v935_v60 = vadd.f32 %v934_v47, %v933_v32  ;;  %v764_v23 = vadd.f32 %v763_v42, %v762_v44  ;;  %v832_v56 = vsel %vm431_vm0, %v363_v10, 0.0  ;;  %v1191_v34 = vld.sshfl [vmem:[%s2093_s1] sm:$0x33 pattern:$0x76325410]  ;;  %v393_v42 = vld [vmem:[%s1377_s28 + $0x6d0] sm:$0xff] }
  0x83   : > { %v885_v58 = vsel %vm431_vm0, %v387_v22, 0.0  ;;  %v938_v63 = vsel %vm431_vm0, %v411_v21, 0.0  ;;  %v697_v27 = vadd.f32 %v1825_v45, %v695_v40  ;;  %v767_v2 = vsel %vm431_vm0, %v333_v18, 0.0  ;;  %v366_v40 = vld [vmem:[%s1377_s28 + $0x5f8] sm:$0xff]  ;;  %v417_v53 = vld [vmem:[%s1377_s28 + $0x790] sm:$0xff] }
  0x84   : > { %v884_v5 = vadd.f32 %v883_v3, %v882_v57  ;;  %v937_v20 = vadd.f32 %v936_v49, %v935_v60  ;;  %v564_v6 = vrot.slane %v563_v46, 4  ;;  %v1968_v13 = vadd.f32 %v1750_v59, %v630_v29 }
  0x85   : > { %v887_v15 = vsel %vm431_vm0, %v388_v12, 0.0  ;;  %v940_v43 = vsel %vm431_vm0, %v412_v54, 0.0  ;;  %v769_v16 = vsel %vm431_vm0, %v334_v51, 0.0  ;;  %v833_v33 = vadd.f32 %v832_v56, %v831_v55  ;;  %v394_v12 = vld [vmem:[%s1377_s28 + $0x6d8] sm:$0xff] }
  0x86   : > { %v886_v45 = vadd.f32 %v885_v58, %v884_v5  ;;  %v939_v28 = vadd.f32 %v938_v63, %v937_v20  ;;  %v766_v8 = vadd.f32 %v765_v35, %v764_v23  ;;  %v834_v24 = vsel %vm431_vm0, %v364_v26, 0.0  ;;  %v418_v54 = vld [vmem:[%s1377_s28 + $0x798] sm:$0xff]  ;;  %v395_v58 = vld [vmem:[%s1377_s28 + $0x6e0] sm:$0xff] }
  0x87   : > { %v889_v59 = vsel %vm431_vm0, %v389_v0, 0.0  ;;  %v942_v50 = vsel %vm431_vm0, %v413_v1, 0.0  ;;  %v1982_v25 = vadd.f32 %v495_v37, %v1855_v17  ;;  %v699_v30 = vadd.f32 %v1842_v36, %v697_v27  ;;  %v392_v37 = vld [vmem:[%s1377_s28 + $0x6c8] sm:$0xff]  ;;  %v419_v63 = vld [vmem:[%s1377_s28 + $0x7a0] sm:$0xff] }
  0x88   : > { %v888_v31 = vadd.f32 %v887_v15, %v886_v45  ;;  %v941_v48 = vadd.f32 %v940_v43, %v939_v28  ;;  %v1988_v7 = vadd.f32 %v564_v6, %v563_v46  ;;  %v633_v39 = vrot.slane %v1968_v13, 4  ;;  %v396_v6 = vld [vmem:[%s1377_s28 + $0x6e8] sm:$0xff] }
  0x89   : > { %v891_v41 = vsel %vm431_vm0, %v390_v4, 0.0  ;;  %v944_v17 = vsel %vm431_vm0, %v414_v11, 0.0  ;;  %v835_v36 = vadd.f32 %v834_v24, %v833_v33  ;;  %v836_v44 = vsel %vm431_vm0, %v365_v61, 0.0  ;;  %v420_v15 = vld [vmem:[%s1377_s28 + $0x7a8] sm:$0xff]  ;;  %v397_v61 = vld [vmem:[%s1377_s28 + $0x6f0] sm:$0xff] }
  0x8a   : > { %v890_v52 = vadd.f32 %v889_v59, %v888_v31  ;;  %v943_v62 = vadd.f32 %v942_v50, %v941_v48  ;;  %v768_v47 = vadd.f32 %v767_v2, %v766_v8  ;;  %v893_v10 = vsel %vm431_vm0, %v391_v19, 0.0  ;;  %v398_v31 = vld [vmem:[%s1377_s28 + $0x6f8] sm:$0xff] }
  0x8b   : > { %v946_v22 = vsel %vm431_vm0, %v415_v14, 0.0  ;;  %v1053_v21 = vcombine.high %v1191_v34, %v1191_v34  ;;  %v701_v32 = vadd.f32 %v1847_v9, %v699_v30  ;;  %v895_v29 = vsel %vm431_vm0, %v392_v37, 0.0  ;;  %v422_v48 = vld [vmem:[%s1377_s28 + $0x7b8] sm:$0xff] }
  0x8c   : > { %v892_v18 = vadd.f32 %v891_v41, %v890_v52  ;;  %v945_v46 = vadd.f32 %v944_v17, %v943_v62  ;;  %v948_v3 = vsel %vm431_vm0, %v416_v38, 0.0  ;;  %v1059_v49 = vsel %vm1057_vm1, %v1191_v34, 0 }
  0x8d   : > { %1192 = vmatprep.subr.msk.bf16.mxu0 %vm1057_vm1, %v1053_v21  ;;  %v837_v35 = vadd.f32 %v836_v44, %v835_v36  ;;  %v1303_v60 = vmov 0   ;;  %v770_v9 = vadd.f32 %v769_v16, %v768_v47  ;;  %v838_v51 = vsel %vm431_vm0, %v366_v40, 0.0  ;;  %v424_v21 = vld [vmem:[%s1377_s28 + $0x7c8] sm:$0xff] }
  0x8e   : > { %v894_v55 = vadd.f32 %v893_v10, %v892_v18  ;;  %v947_v57 = vadd.f32 %v946_v22, %v945_v46  ;;  %1079 = vmatpush1.bf16.msra.mxu0 %v1059_v49  ;;  %1096 = vmatprep.mubr.bf16.mxu0 %v1303_v60  ;;  %v897_v23 = vsel %vm431_vm0, %v393_v42, 0.0  ;;  %v950_v56 = vsel %vm431_vm0, %v417_v53, 0.0 }
  0x8f   : > { %v702_v26 = vrot.slane %v701_v32, 4  ;;  %v497_v27 = vrot.slane %v1982_v25, 2  ;;  %v634_v2 = vadd.f32 %v633_v39, %v1968_v13  ;;  %v899_v5 = vsel %vm431_vm0, %v394_v12, 0.0  ;;  %v421_v13 = vld [vmem:[%s1377_s28 + $0x7b0] sm:$0xff] }
  0x90   : > { %v896_v0 = vadd.f32 %v895_v29, %v894_v55  ;;  %v949_v1 = vadd.f32 %v948_v3, %v947_v57  ;;  %v952_v20 = vsel %vm431_vm0, %v418_v54, 0.0  ;;  %v566_v43 = vrot.slane %v1988_v7, 2  ;;  %v425_v29 = vld [vmem:[%s1377_s28 + $0x7d0] sm:$0xff]  ;;  %v426_v57 = vld [vmem:[%s1377_s28 + $0x7d8] sm:$0xff] }
  0x91   : > { %v839_v4 = vadd.f32 %v838_v51, %v837_v35  ;;  %v771_v33 = vrot.slane %v770_v9, 4  ;;  %v901_v45 = vsel %vm431_vm0, %v395_v58, 0.0  ;;  %v954_v28 = vsel %vm431_vm0, %v419_v63, 0.0  ;;  %v427_v63 = vld [vmem:[%s1377_s28 + $0x7e0] sm:$0xff] }
  0x92   : > { %v898_v11 = vadd.f32 %v897_v23, %v896_v0  ;;  %v951_v16 = vadd.f32 %v950_v56, %v949_v1  ;;  %v703_v8 = vadd.f32 %v702_v26, %v701_v32  ;;  %v498_v50 = vadd.f32 %v497_v27, %v1982_v25  ;;  %v423_v25 = vld [vmem:[%s1377_s28 + $0x7c0] sm:$0xff] }
  0x93   : > { %v635_v19 = vrot.slane %v634_v2, 2  ;;  %v903_v14 = vsel %vm431_vm0, %v396_v6, 0.0  ;;  %v956_v30 = vsel %vm431_vm0, %v420_v15, 0.0  ;;  %v567_v34 = vadd.f32 %v566_v43, %v1988_v7 }
  0x94   : > { %v900_v24 = vadd.f32 %v899_v5, %v898_v11  ;;  %v953_v59 = vadd.f32 %v952_v20, %v951_v16  ;;  %v840_v39 = vrot.slane %v839_v4, 4  ;;  %v772_v37 = vadd.f32 %v771_v33, %v770_v9  ;;  %v428_v20 = vld [vmem:[%s1377_s28 + $0x7e8] sm:$0xff]  ;;  %v429_v33 = vld [vmem:[%s1377_s28 + $0x7f0] sm:$0xff] }
  0x95   : > { %v905_v38 = vsel %vm431_vm0, %v397_v61, 0.0  ;;  %v958_v36 = vsel %vm431_vm0, %v421_v13, 0.0  ;;  %v704_v44 = vrot.slane %v703_v8, 2  ;;  %v499_v47 = vrot.slane %v498_v50, 1 }
  0x96   : > { %v902_v41 = vadd.f32 %v901_v45, %v900_v24  ;;  %v955_v17 = vadd.f32 %v954_v28, %v953_v59  ;;  %v636_v10 = vadd.f32 %v635_v19, %v634_v2  ;;  %v907_v22 = vsel %vm431_vm0, %v398_v31, 0.0  ;;  %v430_v24 = vld [vmem:[%s1377_s28 + $0x7f8] sm:$0xff] }
  0x97   : > { %v960_v7 = vsel %vm431_vm0, %v422_v48, 0.0  ;;  %v568_v40 = vrot.slane %v567_v34, 1  ;;  %v841_v42 = vadd.f32 %v840_v39, %v839_v4  ;;  %v773_v18 = vrot.slane %v772_v37, 2 }
  0x98   : > { %v904_v52 = vadd.f32 %v903_v14, %v902_v41  ;;  %v957_v62 = vadd.f32 %v956_v30, %v955_v17  ;;  %v962_v46 = vsel %vm431_vm0, %v423_v25, 0.0  ;;  %v705_v3 = vadd.f32 %v704_v44, %v703_v8 }
  0x99   : > { %v500_v54 = vadd.f32 %v499_v47, %v498_v50  ;;  %v637_v35 = vrot.slane %v636_v10, 1  ;;  %v964_v55 = vsel %vm431_vm0, %v424_v21, 0.0  ;;  %v569_v60 = vadd.f32 %v568_v40, %v567_v34 }
  0x9a   : > { %v906_v53 = vadd.f32 %v905_v38, %v904_v52  ;;  %v959_v32 = vadd.f32 %v958_v36, %v957_v62  ;;  %v842_v9 = vrot.slane %v841_v42, 2  ;;  %v774_v56 = vadd.f32 %v773_v18, %v772_v37 }
  0x9b   : > { %v966_v58 = vsel %vm431_vm0, %v425_v29, 0.0  ;;  %v706_v26 = vrot.slane %v705_v3, 1  ;;  %v638_v27 = vadd.f32 %v637_v35, %v636_v10  ;;  %v968_v2 = vsel %vm431_vm0, %v426_v57, 0.0 }
  0x9c   : > { %v908_v49 = vadd.f32 %v907_v22, %v906_v53  ;;  %v961_v12 = vadd.f32 %v960_v7, %v959_v32  ;;  %v985_v5 = vmul.f32 0.00390625, %v500_v54  ;;  %v843_v6 = vadd.f32 %v842_v9, %v841_v42 }
  0x9d   : > { %v986_v4 = vmul.f32 0.00390625, %v569_v60  ;;  %v775_v11 = vrot.slane %v774_v56, 1  ;;  %v970_v16 = vsel %vm431_vm0, %v427_v63, 0.0  ;;  %v707_v45 = vadd.f32 %v706_v26, %v705_v3 }
  0x9e   : > { %v909_v51 = vrot.slane %v908_v49, 4  ;;  %v963_v23 = vadd.f32 %v962_v46, %v961_v12  ;;  %v972_v13 = vsel %vm431_vm0, %v428_v20, 0.0  ;;  %v987_v8 = vmul.f32 0.00390625, %v638_v27 }
  0x9f   : > { %v844_v59 = vrot.slane %v843_v6, 1  ;;  %v993_v19 = vpack.c.bf16 %v985_v5, %v985_v5  ;;  %v994_v14 = vpack.c.bf16 %v986_v4, %v986_v4  ;;  %v776_v30 = vadd.f32 %v775_v11, %v774_v56  ;;  %v1002_v5 = vld [vmem:[%s2094_s2] sm:$0x3] }
  0xa0   : > { %v910_v0 = vadd.f32 %v909_v51, %v908_v49  ;;  %v965_v1 = vadd.f32 %v964_v55, %v963_v23  ;;  %v974_v31 = vsel %vm431_vm0, %v429_v33, 0.0  ;;  %v988_v34 = vmul.f32 0.00390625, %v707_v45 }
  0xa1   : > { %v976_v41 = vsel %vm431_vm0, %v430_v24, 0.0  ;;  %v995_v17 = vpack.c.bf16 %v987_v8, %v987_v8  ;;  %v845_v37 = vadd.f32 %v844_v59, %v843_v6  ;;  %v1022_v36 = vunpack.c.l.b16 %v993_v19 }
  0xa2   : > { %v911_v15 = vrot.slane %v910_v0, 2  ;;  %v967_v43 = vadd.f32 %v966_v58, %v965_v1  ;;  %v1023_v25 = vunpack.c.l.b16 %v994_v14  ;;  %v989_v44 = vmul.f32 0.00390625, %v776_v30 }
  0xa3   : > { %v996_v62 = vpack.c.bf16 %v988_v34, %v988_v34  ;;  %v1024_v10 = vunpack.c.l.b16 %v995_v17  ;;  %v990_v7 = vmul.f32 0.00390625, %v845_v37  ;;  %v1004_v1 = vlaneseq }
  0xa4   : > { %v969_v28 = vadd.f32 %v968_v2, %v967_v43  ;;  %v912_v61 = vadd.f32 %v911_v15, %v910_v0  ;;  %v1031_v21 = vsel %vm1030_vm2, %v1023_v25, %v1022_v36  ;;  %v997_v40 = vpack.c.bf16 %v989_v44, %v989_v44 }
  0xa5   : > { %v1025_v53 = vunpack.c.l.b16 %v996_v62  ;;  %v1033_v18 = vsel %vm1032_vm3, %v1024_v10, %v1031_v21  ;;  %v998_v29 = vpack.c.bf16 %v990_v7, %v990_v7  ;;  %v1005_v27 = vshrl.u32 %v1004_v1, 7 }
  0xa6   : > { %v971_v50 = vadd.f32 %v970_v16, %v969_v28  ;;  %v913_v39 = vrot.slane %v912_v61, 1  ;;  %v1026_v3 = vunpack.c.l.b16 %v997_v40 }
  0xa7   : > { %v1035_v12 = vsel %vm1034_vm4, %v1025_v53, %v1033_v18  ;;  %v1027_v55 = vunpack.c.l.b16 %v998_v29  ;;  %v1006_v2 = vsub.s32 0, %v1005_v27  ;;  %v1010_v20 = vsub.s32 1, %v1005_v27 }
  0xa8   : > { %v973_v48 = vadd.f32 %v972_v13, %v971_v50  ;;  %v914_v47 = vadd.f32 %v913_v39, %v912_v61  ;;  %v1037_v57 = vsel %vm1036_vm5, %v1026_v3, %v1035_v12 }
  0xa9   : > { %v1039_v23 = vsel %vm1038_vm6, %v1027_v55, %v1037_v57  ;;  %v1007_v6 = vrot.slane %v1002_v5, %v1006_v2  ;;  %v1011_v15 = vrot.slane %v1002_v5, %v1010_v20 }
  0xaa   : > { %v975_v38 = vadd.f32 %v974_v31, %v973_v48  ;;  %v991_v32 = vmul.f32 0.00390625, %v914_v47 }
  0xac   : > { %v977_v52 = vadd.f32 %v976_v41, %v975_v38  ;;  %v999_v54 = vpack.c.bf16 %v991_v32, %v991_v32 }
  0xae   : > { %v978_v22 = vrot.slane %v977_v52, 4  ;;  %v1028_v9 = vunpack.c.l.b16 %v999_v54 }
  0xb0   : > { %v979_v42 = vadd.f32 %v978_v22, %v977_v52  ;;  %v1041_v58 = vsel %vm1040_vm7, %v1028_v9, %v1039_v23 }
  0xb2   : > { %v980_v46 = vrot.slane %v979_v42, 2 }
  0xb4   : > { %v981_v49 = vadd.f32 %v980_v46, %v979_v42 }
  0xb6   : > { %v982_v35 = vrot.slane %v981_v49, 1 }
  0xb8   : > { %v983_v60 = vadd.f32 %v982_v35, %v981_v49 }
  0xba   : > { %v992_v51 = vmul.f32 0.00390625, %v983_v60 }
  0xbc   : > { %v1000_v56 = vpack.c.bf16 %v992_v51, %v992_v51 }
  0xbe   : > { %v1029_v63 = vunpack.c.l.b16 %v1000_v56 }
  0xc0   : > { %v1043_v26 = vsel %vm1042_vm8, %v1029_v63, %v1041_v58 }
  0xc1   : > { %v1044_v0 = vpack.c.b16 %v1043_v26, %v1043_v26 }
  0xc3   : > { %1193 = vmatmul.mubr.msk.bf16.vlgmr.msra.gmra.mxu0 %vm431_vm0, %v1044_v0 }
 0x183   : > { %v1098_v43 = vpop.f32.mrf.mxu0 }
 0x184   : > { %v1099_v4 = vadd.f32 %v1098_v43, %v1007_v6 }
 0x185   : > { %v1100_v11 = vpop.f32.mrf.mxu0 }
 0x186   : > { %v1101_v16 = vadd.f32 %v1100_v11, %v1011_v15  ;;  %v1105_v33 = vmax.f32 %v1099_v4, 0.0 }
 0x187   : > { %v1102_v45 = vpop.f32.mrf.mxu0 }
 0x188   : > { %v1106_v28 = vmax.f32 %v1101_v16, 0.0  ;;  %1107 = vst [vmem:[%s166_s9] sm:$0xff] %v1105_v33 }
 0x189   : > { %v1103_v61 = vpop.f32.mrf.mxu0 }
 0x18a   : > { %1108 = vst [vmem:[%s166_s9 + $0x8] sm:$0xff] %v1106_v28 }
 0x18b   : > { %1254 = shalt.err (!%p1251_p3)
}
 0x18c   : > { %s1255_s27 = scalar_lea.hbm %s2057_s19, 256  ;;  %s1259_s30 = scalar_lea.hbm %s2095_s3, 512 }
 0x18d   : > { %p1256_p4 = scmp.ne.s32.totalorder %s2057_s19, %s1255_s27  ;;  %p1260_p9 = scmp.lt.s32.totalorder %s2057_s19, %s2095_s3 }
 0x18e   : > { %p1261_p10 = scmp.lt.s32.totalorder %s1259_s30, %s1255_s27 }
 0x18f   : > { %p1257_p7 = pnand %p1256_p4, %p1363_p5 }
 0x190   : > { %p1262_p11 = por %p1261_p10, %p1260_p9 }
 0x191   : > { %p1258_p8 = pneg %p1257_p7 }
 0x193   : > { %p1263_p12 = pnand %p1262_p11, %p1258_p8 }
 0x195   : > { %1266 = shalt.err (!%p1263_p12)
}
 0x196   : > { %1201 = dma.vmem_to_hbm [thread:$0]  (%p1363_p5), %s1125_s10, 256, %s2057_s19, %s1110_s20  }
 0x197 PF: > { %p1207_p13 = scmp.ge.s32.totalorder %s1301_s15, 2  ;;  %s1136_s6 = sand.u32 1, %s1289_s12  }
 0x198   : > { %s1137_s7 = scalar_lea.sflag [#allocation3], %s1136_s6 }
 0x199   : > { %p1204_p0 = pnand %p1207_p13, %p1367_p6 }
 0x19b   : > { %p1205_p1 = pneg %p1204_p0 }
 0x19d   : > { %1284 = dma.done.wait (%p1205_p1), %s1137_s7, 256  }
 0x19e   : > { %1286 = vsyncadd (%p1205_p1), %s1137_s7, 4294967040  ;;  %p13_p2 = scmp.ge.s32.totalorder %s1350_s18, 4   ;;  %s2098_s12 = smov %s1293_s13 }
 0x19f   : > { %s2099_s13 = smov %s1297_s14  ;;  %s2100_s14 = smov %s1361_s21 }
 0x1a0   : > { %s2101_s15 = smov %s1350_s18  ;;  %15 = sbr.rel (!%p13_p2) target bundleno = 3 (0x3), region = 67 }
 0x1a5   :  { %1142 = vsyncpa [#allocation3], 1 }
 0x1a6   :  { %1144 = vsyncpa [#allocation3 + $0x1], 1 }

</bundles_post_ra>
